<compile_context>
chip_gen: v5e
topology: v5e:2x2
jax: 0.10.0
libtpu: 0.0.40
codegen_flags: <defaults>
</compile_context>

<pallas_src>
import math

import jax
import jax.numpy as jnp
from jax import lax
from jax.experimental import pallas as pl
from jax.experimental.pallas import tpu as pltpu

# ---- small, d2l-consistent configuration -----------------------------------
B, S, H = 2, 8, 32          # batch, sequence, num_hiddens
NUM_HEADS = 2
DH = H // NUM_HEADS
FFN = 64                    # ffn_num_hiddens
NUM_LAYERS = 2
VOCAB = 64
MAX_LEN = 16
HIDDEN_CLS = 256            # bert.hidden output size (fixed by nn.Linear(256, 3))
NUM_CLASSES = 3
OUT_PAD = 128               # lane-dense logits slab width (>= NUM_CLASSES, multiple of 128)
EPS = 1e-5


def _layernorm(x, gamma, beta):
    mu = jnp.mean(x, axis=-1, keepdims=True)
    var = jnp.mean((x - mu) ** 2, axis=-1, keepdims=True)
    return (x - mu) * lax.rsqrt(var + EPS) * gamma + beta


# ---------------------------------------------------------------------------
# Single fused Pallas kernel: encoder blocks (MHA + AddNorm + FFN + AddNorm) x L
# followed by the classifier head.
# ---------------------------------------------------------------------------
def fused_bert_kernel(x_ref, vlen_ref,
                      wqkv_ref, bqkv_ref, wo_ref, bo_ref, g1_ref, be1_ref,
                      w1_ref, b1_ref, w2_ref, b2_ref, g2_ref, be2_ref,
                      wh_ref, bh_ref, wc_ref, bc_ref,
                      out_ref):
    x = x_ref[...]                                                  # (B*S, H) f32

    # Valid-key mask for all batches at once (no per-b scalar reads).
    key_pos = lax.broadcasted_iota(jnp.int32, (B, S, S), 2)         # key index
    mask = key_pos < vlen_ref[...]                                  # (B,1,1) -> (B,S,S)

    for l in range(NUM_LAYERS):
        # ---- multi-head self-attention (QKV fused; 1/sqrt(DH) folded into Wq/bq) ----
        qkv = jnp.dot(x, wqkv_ref[l], preferred_element_type=jnp.float32) + bqkv_ref[l]
        q = qkv[:, 0 * H:1 * H].reshape(B, S, H)
        k = qkv[:, 1 * H:2 * H].reshape(B, S, H)
        v = qkv[:, 2 * H:3 * H].reshape(B, S, H)

        wo_l = wo_ref[l]                                            # (H, H)
        ao = jnp.zeros((B * S, H), jnp.float32)
        for h in range(NUM_HEADS):
            hs = slice(h * DH, (h + 1) * DH)
            qh, kh, vh = q[:, :, hs], k[:, :, hs], v[:, :, hs]      # (B, S, DH)
            # scores: 'bqd,bkd->bqk' batched over B
            scores = lax.dot_general(qh, kh, (((2,), (2,)), ((0,), (0,))),
                                     preferred_element_type=jnp.float32)   # (B,S,S)
            scores = jnp.where(mask, scores, -1e6)
            scores = scores - jnp.max(scores, axis=-1, keepdims=True)
            e = jnp.exp(scores)
            attn = e / jnp.sum(e, axis=-1, keepdims=True)
            # 'bqk,bkd->bqd' batched over B
            oh = lax.dot_general(attn, vh, (((2,), (1,)), ((0,), (0,))),
                                 preferred_element_type=jnp.float32)       # (B,S,DH)
            # Fold this head's contribution straight into the Wo projection:
            # concat(heads) @ Wo == sum_h head_h @ Wo[h*DH:(h+1)*DH, :]
            ao = ao + jnp.dot(oh.reshape(B * S, DH), wo_l[hs, :],
                              preferred_element_type=jnp.float32)
        ao = ao + bo_ref[l]

        y = _layernorm(x + ao, g1_ref[l], be1_ref[l])               # AddNorm 1
        f = jnp.maximum(jnp.dot(y, w1_ref[l], preferred_element_type=jnp.float32)
                        + b1_ref[l], 0.0)                           # PositionWiseFFN (ReLU)
        f = jnp.dot(f, w2_ref[l], preferred_element_type=jnp.float32) + b2_ref[l]
        x = _layernorm(y + f, g2_ref[l], be2_ref[l])                # AddNorm 2

    # Classifier head, computed for all B*S rows (M=2 vs M=16 costs the same MXU
    # pushes) so the output store is a lane-dense, full-sublane (B*S, 128) slab.
    # The wrapper selects the CLS rows and the first NUM_CLASSES lanes.
    hdn = jnp.tanh(jnp.dot(x, wh_ref[...], preferred_element_type=jnp.float32)
                   + bh_ref[...])                                   # (B*S, 256)
    out_ref[...] = jnp.dot(hdn, wc_ref[...],
                           preferred_element_type=jnp.float32) + bc_ref[...]


# ---------------------------------------------------------------------------
# Parameter packing for the fused kernel (QKV fusion, scale fold, layer stacking,
# lane-padding of the classifier output weights).
# ---------------------------------------------------------------------------
def pack_params(params):
    scale = 1.0 / math.sqrt(DH)
    layers = params['layers']
    wqkv = jnp.stack([jnp.concatenate([lp['wq'] * scale, lp['wk'], lp['wv']], axis=1)
                      for lp in layers])                            # (L, H, 3H)
    bqkv = jnp.stack([jnp.concatenate([lp['bq'] * scale, lp['bk'], lp['bv']], axis=1)
                      for lp in layers])                            # (L, 1, 3H)

    def stk(name):
        return jnp.stack([lp[name] for lp in layers])

    wc_pad = jnp.pad(params['wc'], ((0, 0), (0, OUT_PAD - NUM_CLASSES)))
    bc_pad = jnp.pad(params['bc'], ((0, 0), (0, OUT_PAD - NUM_CLASSES)))
    return dict(wqkv=wqkv, bqkv=bqkv, wo=stk('wo'), bo=stk('bo'),
                g1=stk('g1'), be1=stk('be1'), w1=stk('w1'), b1=stk('b1'),
                w2=stk('w2'), b2=stk('b2'), g2=stk('g2'), be2=stk('be2'),
                wh=params['wh'], bh=params['bh'], wc=wc_pad, bc=bc_pad)


# ---------------------------------------------------------------------------
# Full forward: embedding gathers are plain-JAX glue; everything else is ONE kernel.
# ---------------------------------------------------------------------------
def bert_classifier_forward(tokens, segments, valid_lens, params):
    x = (params['tok_emb'][tokens]
         + params['seg_emb'][segments]
         + params['pos_emb'][:, :S, :])                             # (B, S, H)
    kp = pack_params(params)

    x_flat = x.reshape(B * S, H)                                    # flatten once at the boundary
    vlen = valid_lens.astype(jnp.int32).reshape(B, 1, 1)

    vmem = pl.BlockSpec(memory_space=pltpu.MemorySpace.VMEM)
    logits_pad = pl.pallas_call(
        fused_bert_kernel,
        out_shape=jax.ShapeDtypeStruct((B * S, OUT_PAD), jnp.float32),
        in_specs=[vmem] * 18,
        out_specs=vmem,
    )(x_flat, vlen,
      kp['wqkv'], kp['bqkv'], kp['wo'], kp['bo'], kp['g1'], kp['be1'],
      kp['w1'], kp['b1'], kp['w2'], kp['b2'], kp['g2'], kp['be2'],
      kp['wh'], kp['bh'], kp['wc'], kp['bc'])

    # encoded_X[:, 0, :] -> rows b*S; first NUM_CLASSES lanes are the real logits.
    return logits_pad.reshape(B, S, OUT_PAD)[:, 0, :NUM_CLASSES]


# ---------------------------------------------------------------------------
# Pure-JAX reference (same math) for a correctness check
# ---------------------------------------------------------------------------
def reference_forward(tokens, segments, valid_lens, params):
    x = (params['tok_emb'][tokens]
         + params['seg_emb'][segments]
         + params['pos_emb'][:, :S, :])
    for lp in params['layers']:
        q = x @ lp['wq'] + lp['bq']
        k = x @ lp['wk'] + lp['bk']
        v = x @ lp['wv'] + lp['bv']

        def split(t):
            return t.reshape(B, S, NUM_HEADS, DH).transpose(0, 2, 1, 3)
        qh, kh, vh = split(q), split(k), split(v)
        scores = jnp.einsum('bnqd,bnkd->bnqk', qh, kh) / math.sqrt(DH)
        mask = jnp.arange(S)[None, None, None, :] < valid_lens[:, None, None, None]
        scores = jnp.where(mask, scores, -1e6)
        attn = jax.nn.softmax(scores, axis=-1)
        o = jnp.einsum('bnqk,bnkd->bnqd', attn, vh).transpose(0, 2, 1, 3).reshape(B, S, H)
        o = o @ lp['wo'] + lp['bo']
        y = _layernorm(x + o, lp['g1'], lp['be1'])
        f = jax.nn.relu(y @ lp['w1'] + lp['b1'])
        f = f @ lp['w2'] + lp['b2']
        x = _layernorm(y + f, lp['g2'], lp['be2'])
    cls_vec = x[:, 0, :]
    hdn = jnp.tanh(cls_vec @ params['wh'] + params['bh'])
    return hdn @ params['wc'] + params['bc']


# ---------------------------------------------------------------------------
# Deterministic synthetic parameters
# ---------------------------------------------------------------------------
def init_params(key):
    keys = iter(jax.random.split(key, 64))

    def nrm(shape):
        return 0.02 * jax.random.normal(next(keys), shape, jnp.float32)

    params = {
        'tok_emb': nrm((VOCAB, H)),
        'seg_emb': nrm((2, H)),
        'pos_emb': nrm((1, MAX_LEN, H)),
        'layers': [],
        'wh': nrm((H, HIDDEN_CLS)), 'bh': jnp.zeros((1, HIDDEN_CLS), jnp.float32),
        'wc': nrm((HIDDEN_CLS, NUM_CLASSES)), 'bc': jnp.zeros((1, NUM_CLASSES), jnp.float32),
    }
    for _ in range(NUM_LAYERS):
        params['layers'].append({
            'wq': nrm((H, H)), 'bq': jnp.zeros((1, H), jnp.float32),
            'wk': nrm((H, H)), 'bk': jnp.zeros((1, H), jnp.float32),
            'wv': nrm((H, H)), 'bv': jnp.zeros((1, H), jnp.float32),
            'wo': nrm((H, H)), 'bo': jnp.zeros((1, H), jnp.float32),
            'g1': jnp.ones((1, H), jnp.float32), 'be1': jnp.zeros((1, H), jnp.float32),
            'w1': nrm((H, FFN)), 'b1': jnp.zeros((1, FFN), jnp.float32),
            'w2': nrm((FFN, H)), 'b2': jnp.zeros((1, H), jnp.float32),
            'g2': jnp.ones((1, H), jnp.float32), 'be2': jnp.zeros((1, H), jnp.float32),
        })
    return params


if __name__ == "__main__":
    root = jax.random.PRNGKey(0)
    pkey, tkey = jax.random.split(root)
    params = init_params(pkey)

    tokens = jax.random.randint(tkey, (B, S), 0, VOCAB, dtype=jnp.int32)
    segments = jnp.concatenate([jnp.zeros((B, S // 2), jnp.int32),
                                jnp.ones((B, S - S // 2), jnp.int32)], axis=1)
    valid_lens = jnp.array([S, 5], dtype=jnp.int32)

    fwd = jax.jit(bert_classifier_forward)
    out = fwd(tokens, segments, valid_lens, params)
    out = jax.block_until_ready(out)
    assert out.shape == (B, NUM_CLASSES) and out.dtype == jnp.float32

    ref = reference_forward(tokens, segments, valid_lens, params)
    if not jnp.allclose(out, ref, rtol=1e-4, atol=1e-4):
        raise AssertionError(f"Pallas output mismatch:\n{out}\nvs reference:\n{ref}")

    print("KERNEL_OK")
</pallas_src>

<mosaic_0001>
module attributes {stable_mosaic.version = 11 : i64} {
  func.func @fused_bert_kernel(%arg0: memref<16x32xf32, #tpu.memory_space<vmem>>, %arg1: memref<2x1x1xi32, #tpu.memory_space<vmem>>, %arg2: memref<2x32x96xf32, #tpu.memory_space<vmem>>, %arg3: memref<2x1x96xf32, #tpu.memory_space<vmem>>, %arg4: memref<2x32x32xf32, #tpu.memory_space<vmem>>, %arg5: memref<2x1x32xf32, #tpu.memory_space<vmem>>, %arg6: memref<2x1x32xf32, #tpu.memory_space<vmem>>, %arg7: memref<2x1x32xf32, #tpu.memory_space<vmem>>, %arg8: memref<2x32x64xf32, #tpu.memory_space<vmem>>, %arg9: memref<2x1x64xf32, #tpu.memory_space<vmem>>, %arg10: memref<2x64x32xf32, #tpu.memory_space<vmem>>, %arg11: memref<2x1x32xf32, #tpu.memory_space<vmem>>, %arg12: memref<2x1x32xf32, #tpu.memory_space<vmem>>, %arg13: memref<2x1x32xf32, #tpu.memory_space<vmem>>, %arg14: memref<32x256xf32, #tpu.memory_space<vmem>>, %arg15: memref<1x256xf32, #tpu.memory_space<vmem>>, %arg16: memref<256x128xf32, #tpu.memory_space<vmem>>, %arg17: memref<1x128xf32, #tpu.memory_space<vmem>>, %arg18: memref<16x128xf32, #tpu.memory_space<vmem>>) attributes {dimension_semantics = [], scalar_prefetch = 0 : i64, scratch_operands = 0 : i64, tpu.core_type = #tpu.core_type<tc>} {
    %c0 = arith.constant 0 : index
    %c0_0 = arith.constant 0 : index
    %0 = vector.load %arg0[%c0, %c0_0] : memref<16x32xf32, #tpu.memory_space<vmem>>, vector<16x32xf32>
    %1 = tpu.iota {dimensions = array<i32: 2>} : vector<2x8x8xi32>
    %c0_1 = arith.constant 0 : index
    %c0_2 = arith.constant 0 : index
    %c0_3 = arith.constant 0 : index
    %2 = vector.load %arg1[%c0_1, %c0_2, %c0_3] : memref<2x1x1xi32, #tpu.memory_space<vmem>>, vector<2x1x1xi32>
    %3 = vector.broadcast %2 : vector<2x1x1xi32> to vector<2x8x8xi32>
    %4 = arith.cmpi slt, %1, %3 : vector<2x8x8xi32>
    %c0_4 = arith.constant 0 : index
    %c0_5 = arith.constant 0 : index
    %c0_6 = arith.constant 0 : index
    %5 = vector.load %arg2[%c0_4, %c0_5, %c0_6] : memref<2x32x96xf32, #tpu.memory_space<vmem>>, vector<1x32x96xf32>
    %6 = vector.shape_cast %5 : vector<1x32x96xf32> to vector<32x96xf32>
    %cst = arith.constant dense<0.000000e+00> : vector<16x96xf32>
    %7 = tpu.matmul %0, %6, %cst {dimension_numbers = #tpu.dot_dimension_numbers<[1], [0], [0], [1], [0, 0, 1, 1], [], []>} : vector<16x32xf32>, vector<32x96xf32>, vector<16x96xf32> -> vector<16x96xf32>
    %c0_7 = arith.constant 0 : index
    %c0_8 = arith.constant 0 : index
    %c0_9 = arith.constant 0 : index
    %8 = vector.load %arg3[%c0_7, %c0_8, %c0_9] : memref<2x1x96xf32, #tpu.memory_space<vmem>>, vector<1x1x96xf32>
    %9 = vector.shape_cast %8 : vector<1x1x96xf32> to vector<1x96xf32>
    %10 = vector.broadcast %9 : vector<1x96xf32> to vector<16x96xf32>
    %11 = arith.addf %7, %10 : vector<16x96xf32>
    %12 = vector.extract_strided_slice %11 {offsets = [0, 0], sizes = [16, 32], strides = [1, 1]} : vector<16x96xf32> to vector<16x32xf32>
    %13 = vector.shape_cast %12 : vector<16x32xf32> to vector<2x8x32xf32>
    %14 = vector.extract_strided_slice %11 {offsets = [0, 32], sizes = [16, 32], strides = [1, 1]} : vector<16x96xf32> to vector<16x32xf32>
    %15 = vector.shape_cast %14 : vector<16x32xf32> to vector<2x8x32xf32>
    %16 = vector.extract_strided_slice %11 {offsets = [0, 64], sizes = [16, 32], strides = [1, 1]} : vector<16x96xf32> to vector<16x32xf32>
    %17 = vector.shape_cast %16 : vector<16x32xf32> to vector<2x8x32xf32>
    %c0_10 = arith.constant 0 : index
    %c0_11 = arith.constant 0 : index
    %c0_12 = arith.constant 0 : index
    %18 = vector.load %arg4[%c0_10, %c0_11, %c0_12] : memref<2x32x32xf32, #tpu.memory_space<vmem>>, vector<1x32x32xf32>
    %19 = vector.shape_cast %18 : vector<1x32x32xf32> to vector<32x32xf32>
    %cst_13 = arith.constant 0.000000e+00 : f32
    %20 = vector.broadcast %cst_13 : f32 to vector<16x32xf32>
    %21 = vector.extract_strided_slice %13 {offsets = [0, 0, 0], sizes = [2, 8, 16], strides = [1, 1, 1]} : vector<2x8x32xf32> to vector<2x8x16xf32>
    %22 = vector.extract_strided_slice %15 {offsets = [0, 0, 0], sizes = [2, 8, 16], strides = [1, 1, 1]} : vector<2x8x32xf32> to vector<2x8x16xf32>
    %23 = vector.extract_strided_slice %17 {offsets = [0, 0, 0], sizes = [2, 8, 16], strides = [1, 1, 1]} : vector<2x8x32xf32> to vector<2x8x16xf32>
    %cst_14 = arith.constant dense<0.000000e+00> : vector<2x8x8xf32>
    %24 = tpu.matmul %21, %22, %cst_14 {dimension_numbers = #tpu.dot_dimension_numbers<[2], [2], [1], [1], [0, 0, 0, 1, 1, 1], [0], [0]>} : vector<2x8x16xf32>, vector<2x8x16xf32>, vector<2x8x8xf32> -> vector<2x8x8xf32>
    %cst_15 = arith.constant -1.000000e+06 : f32
    %25 = vector.broadcast %cst_15 : f32 to vector<2x8x8xf32>
    %26 = arith.select %4, %24, %25 : vector<2x8x8xi1>, vector<2x8x8xf32>
    %cst_16 = arith.constant dense<0xFF800000> : vector<2x8xf32>
    %27 = vector.multi_reduction <maximumf>, %26, %cst_16 [2] : vector<2x8x8xf32> to vector<2x8xf32>
    %28 = vector.shape_cast %27 : vector<2x8xf32> to vector<2x8x1xf32>
    %29 = vector.broadcast %28 : vector<2x8x1xf32> to vector<2x8x8xf32>
    %30 = arith.subf %26, %29 : vector<2x8x8xf32>
    %31 = math.exp %30 : vector<2x8x8xf32>
    %cst_17 = arith.constant dense<0.000000e+00> : vector<2x8xf32>
    %32 = vector.multi_reduction <add>, %31, %cst_17 [2] : vector<2x8x8xf32> to vector<2x8xf32>
    %33 = vector.shape_cast %32 : vector<2x8xf32> to vector<2x8x1xf32>
    %34 = vector.broadcast %33 : vector<2x8x1xf32> to vector<2x8x8xf32>
    %35 = arith.divf %31, %34 : vector<2x8x8xf32>
    %cst_18 = arith.constant dense<0.000000e+00> : vector<2x8x16xf32>
    %36 = tpu.matmul %35, %23, %cst_18 {dimension_numbers = #tpu.dot_dimension_numbers<[2], [1], [1], [2], [0, 0, 0, 1, 1, 2], [0], [0]>} : vector<2x8x8xf32>, vector<2x8x16xf32>, vector<2x8x16xf32> -> vector<2x8x16xf32>
    %37 = vector.shape_cast %36 : vector<2x8x16xf32> to vector<16x16xf32>
    %38 = vector.extract_strided_slice %19 {offsets = [0, 0], sizes = [16, 32], strides = [1, 1]} : vector<32x32xf32> to vector<16x32xf32>
    %cst_19 = arith.constant dense<0.000000e+00> : vector<16x32xf32>
    %39 = tpu.matmul %37, %38, %cst_19 {dimension_numbers = #tpu.dot_dimension_numbers<[1], [0], [0], [1], [0, 0, 1, 1], [], []>} : vector<16x16xf32>, vector<16x32xf32>, vector<16x32xf32> -> vector<16x32xf32>
    %40 = arith.addf %20, %39 : vector<16x32xf32>
    %41 = vector.extract_strided_slice %13 {offsets = [0, 0, 16], sizes = [2, 8, 16], strides = [1, 1, 1]} : vector<2x8x32xf32> to vector<2x8x16xf32>
    %42 = vector.extract_strided_slice %15 {offsets = [0, 0, 16], sizes = [2, 8, 16], strides = [1, 1, 1]} : vector<2x8x32xf32> to vector<2x8x16xf32>
    %43 = vector.extract_strided_slice %17 {offsets = [0, 0, 16], sizes = [2, 8, 16], strides = [1, 1, 1]} : vector<2x8x32xf32> to vector<2x8x16xf32>
    %cst_20 = arith.constant dense<0.000000e+00> : vector<2x8x8xf32>
    %44 = tpu.matmul %41, %42, %cst_20 {dimension_numbers = #tpu.dot_dimension_numbers<[2], [2], [1], [1], [0, 0, 0, 1, 1, 1], [0], [0]>} : vector<2x8x16xf32>, vector<2x8x16xf32>, vector<2x8x8xf32> -> vector<2x8x8xf32>
    %cst_21 = arith.constant -1.000000e+06 : f32
    %45 = vector.broadcast %cst_21 : f32 to vector<2x8x8xf32>
    %46 = arith.select %4, %44, %45 : vector<2x8x8xi1>, vector<2x8x8xf32>
    %cst_22 = arith.constant dense<0xFF800000> : vector<2x8xf32>
    %47 = vector.multi_reduction <maximumf>, %46, %cst_22 [2] : vector<2x8x8xf32> to vector<2x8xf32>
    %48 = vector.shape_cast %47 : vector<2x8xf32> to vector<2x8x1xf32>
    %49 = vector.broadcast %48 : vector<2x8x1xf32> to vector<2x8x8xf32>
    %50 = arith.subf %46, %49 : vector<2x8x8xf32>
    %51 = math.exp %50 : vector<2x8x8xf32>
    %cst_23 = arith.constant dense<0.000000e+00> : vector<2x8xf32>
    %52 = vector.multi_reduction <add>, %51, %cst_23 [2] : vector<2x8x8xf32> to vector<2x8xf32>
    %53 = vector.shape_cast %52 : vector<2x8xf32> to vector<2x8x1xf32>
    %54 = vector.broadcast %53 : vector<2x8x1xf32> to vector<2x8x8xf32>
    %55 = arith.divf %51, %54 : vector<2x8x8xf32>
    %cst_24 = arith.constant dense<0.000000e+00> : vector<2x8x16xf32>
    %56 = tpu.matmul %55, %43, %cst_24 {dimension_numbers = #tpu.dot_dimension_numbers<[2], [1], [1], [2], [0, 0, 0, 1, 1, 2], [0], [0]>} : vector<2x8x8xf32>, vector<2x8x16xf32>, vector<2x8x16xf32> -> vector<2x8x16xf32>
    %57 = vector.shape_cast %56 : vector<2x8x16xf32> to vector<16x16xf32>
    %58 = vector.extract_strided_slice %19 {offsets = [16, 0], sizes = [16, 32], strides = [1, 1]} : vector<32x32xf32> to vector<16x32xf32>
    %cst_25 = arith.constant dense<0.000000e+00> : vector<16x32xf32>
    %59 = tpu.matmul %57, %58, %cst_25 {dimension_numbers = #tpu.dot_dimension_numbers<[1], [0], [0], [1], [0, 0, 1, 1], [], []>} : vector<16x16xf32>, vector<16x32xf32>, vector<16x32xf32> -> vector<16x32xf32>
    %60 = arith.addf %40, %59 : vector<16x32xf32>
    %c0_26 = arith.constant 0 : index
    %c0_27 = arith.constant 0 : index
    %c0_28 = arith.constant 0 : index
    %61 = vector.load %arg5[%c0_26, %c0_27, %c0_28] : memref<2x1x32xf32, #tpu.memory_space<vmem>>, vector<1x1x32xf32>
    %62 = vector.shape_cast %61 : vector<1x1x32xf32> to vector<1x32xf32>
    %63 = vector.broadcast %62 : vector<1x32xf32> to vector<16x32xf32>
    %64 = arith.addf %60, %63 : vector<16x32xf32>
    %65 = arith.addf %0, %64 : vector<16x32xf32>
    %c0_29 = arith.constant 0 : index
    %c0_30 = arith.constant 0 : index
    %c0_31 = arith.constant 0 : index
    %66 = vector.load %arg6[%c0_29, %c0_30, %c0_31] : memref<2x1x32xf32, #tpu.memory_space<vmem>>, vector<1x1x32xf32>
    %67 = vector.shape_cast %66 : vector<1x1x32xf32> to vector<1x32xf32>
    %c0_32 = arith.constant 0 : index
    %c0_33 = arith.constant 0 : index
    %c0_34 = arith.constant 0 : index
    %68 = vector.load %arg7[%c0_32, %c0_33, %c0_34] : memref<2x1x32xf32, #tpu.memory_space<vmem>>, vector<1x1x32xf32>
    %69 = vector.shape_cast %68 : vector<1x1x32xf32> to vector<1x32xf32>
    %cst_35 = arith.constant dense<0.000000e+00> : vector<16xf32>
    %70 = vector.multi_reduction <add>, %65, %cst_35 [1] : vector<16x32xf32> to vector<16xf32>
    %71 = vector.shape_cast %70 : vector<16xf32> to vector<16x1xf32>
    %cst_36 = arith.constant 3.200000e+01 : f32
    %72 = vector.broadcast %cst_36 : f32 to vector<16x1xf32>
    %73 = arith.divf %71, %72 : vector<16x1xf32>
    %74 = vector.broadcast %73 : vector<16x1xf32> to vector<16x32xf32>
    %75 = arith.subf %65, %74 : vector<16x32xf32>
    %76 = arith.mulf %75, %75 : vector<16x32xf32>
    %cst_37 = arith.constant dense<0.000000e+00> : vector<16xf32>
    %77 = vector.multi_reduction <add>, %76, %cst_37 [1] : vector<16x32xf32> to vector<16xf32>
    %78 = vector.shape_cast %77 : vector<16xf32> to vector<16x1xf32>
    %cst_38 = arith.constant 3.200000e+01 : f32
    %79 = vector.broadcast %cst_38 : f32 to vector<16x1xf32>
    %80 = arith.divf %78, %79 : vector<16x1xf32>
    %81 = vector.broadcast %73 : vector<16x1xf32> to vector<16x32xf32>
    %82 = arith.subf %65, %81 : vector<16x32xf32>
    %cst_39 = arith.constant 9.99999974E-6 : f32
    %83 = vector.broadcast %cst_39 : f32 to vector<16x1xf32>
    %84 = arith.addf %80, %83 : vector<16x1xf32>
    %85 = math.rsqrt %84 : vector<16x1xf32>
    %86 = vector.broadcast %85 : vector<16x1xf32> to vector<16x32xf32>
    %87 = arith.mulf %82, %86 : vector<16x32xf32>
    %88 = vector.broadcast %67 : vector<1x32xf32> to vector<16x32xf32>
    %89 = arith.mulf %87, %88 : vector<16x32xf32>
    %90 = vector.broadcast %69 : vector<1x32xf32> to vector<16x32xf32>
    %91 = arith.addf %89, %90 : vector<16x32xf32>
    %c0_40 = arith.constant 0 : index
    %c0_41 = arith.constant 0 : index
    %c0_42 = arith.constant 0 : index
    %92 = vector.load %arg8[%c0_40, %c0_41, %c0_42] : memref<2x32x64xf32, #tpu.memory_space<vmem>>, vector<1x32x64xf32>
    %93 = vector.shape_cast %92 : vector<1x32x64xf32> to vector<32x64xf32>
    %cst_43 = arith.constant dense<0.000000e+00> : vector<16x64xf32>
    %94 = tpu.matmul %91, %93, %cst_43 {dimension_numbers = #tpu.dot_dimension_numbers<[1], [0], [0], [1], [0, 0, 1, 1], [], []>} : vector<16x32xf32>, vector<32x64xf32>, vector<16x64xf32> -> vector<16x64xf32>
    %c0_44 = arith.constant 0 : index
    %c0_45 = arith.constant 0 : index
    %c0_46 = arith.constant 0 : index
    %95 = vector.load %arg9[%c0_44, %c0_45, %c0_46] : memref<2x1x64xf32, #tpu.memory_space<vmem>>, vector<1x1x64xf32>
    %96 = vector.shape_cast %95 : vector<1x1x64xf32> to vector<1x64xf32>
    %97 = vector.broadcast %96 : vector<1x64xf32> to vector<16x64xf32>
    %98 = arith.addf %94, %97 : vector<16x64xf32>
    %cst_47 = arith.constant 0.000000e+00 : f32
    %99 = vector.broadcast %cst_47 : f32 to vector<16x64xf32>
    %100 = arith.maximumf %98, %99 : vector<16x64xf32>
    %c0_48 = arith.constant 0 : index
    %c0_49 = arith.constant 0 : index
    %c0_50 = arith.constant 0 : index
    %101 = vector.load %arg10[%c0_48, %c0_49, %c0_50] : memref<2x64x32xf32, #tpu.memory_space<vmem>>, vector<1x64x32xf32>
    %102 = vector.shape_cast %101 : vector<1x64x32xf32> to vector<64x32xf32>
    %cst_51 = arith.constant dense<0.000000e+00> : vector<16x32xf32>
    %103 = tpu.matmul %100, %102, %cst_51 {dimension_numbers = #tpu.dot_dimension_numbers<[1], [0], [0], [1], [0, 0, 1, 1], [], []>} : vector<16x64xf32>, vector<64x32xf32>, vector<16x32xf32> -> vector<16x32xf32>
    %c0_52 = arith.constant 0 : index
    %c0_53 = arith.constant 0 : index
    %c0_54 = arith.constant 0 : index
    %104 = vector.load %arg11[%c0_52, %c0_53, %c0_54] : memref<2x1x32xf32, #tpu.memory_space<vmem>>, vector<1x1x32xf32>
    %105 = vector.shape_cast %104 : vector<1x1x32xf32> to vector<1x32xf32>
    %106 = vector.broadcast %105 : vector<1x32xf32> to vector<16x32xf32>
    %107 = arith.addf %103, %106 : vector<16x32xf32>
    %108 = arith.addf %91, %107 : vector<16x32xf32>
    %c0_55 = arith.constant 0 : index
    %c0_56 = arith.constant 0 : index
    %c0_57 = arith.constant 0 : index
    %109 = vector.load %arg12[%c0_55, %c0_56, %c0_57] : memref<2x1x32xf32, #tpu.memory_space<vmem>>, vector<1x1x32xf32>
    %110 = vector.shape_cast %109 : vector<1x1x32xf32> to vector<1x32xf32>
    %c0_58 = arith.constant 0 : index
    %c0_59 = arith.constant 0 : index
    %c0_60 = arith.constant 0 : index
    %111 = vector.load %arg13[%c0_58, %c0_59, %c0_60] : memref<2x1x32xf32, #tpu.memory_space<vmem>>, vector<1x1x32xf32>
    %112 = vector.shape_cast %111 : vector<1x1x32xf32> to vector<1x32xf32>
    %cst_61 = arith.constant dense<0.000000e+00> : vector<16xf32>
    %113 = vector.multi_reduction <add>, %108, %cst_61 [1] : vector<16x32xf32> to vector<16xf32>
    %114 = vector.shape_cast %113 : vector<16xf32> to vector<16x1xf32>
    %cst_62 = arith.constant 3.200000e+01 : f32
    %115 = vector.broadcast %cst_62 : f32 to vector<16x1xf32>
    %116 = arith.divf %114, %115 : vector<16x1xf32>
    %117 = vector.broadcast %116 : vector<16x1xf32> to vector<16x32xf32>
    %118 = arith.subf %108, %117 : vector<16x32xf32>
    %119 = arith.mulf %118, %118 : vector<16x32xf32>
    %cst_63 = arith.constant dense<0.000000e+00> : vector<16xf32>
    %120 = vector.multi_reduction <add>, %119, %cst_63 [1] : vector<16x32xf32> to vector<16xf32>
    %121 = vector.shape_cast %120 : vector<16xf32> to vector<16x1xf32>
    %cst_64 = arith.constant 3.200000e+01 : f32
    %122 = vector.broadcast %cst_64 : f32 to vector<16x1xf32>
    %123 = arith.divf %121, %122 : vector<16x1xf32>
    %124 = vector.broadcast %116 : vector<16x1xf32> to vector<16x32xf32>
    %125 = arith.subf %108, %124 : vector<16x32xf32>
    %cst_65 = arith.constant 9.99999974E-6 : f32
    %126 = vector.broadcast %cst_65 : f32 to vector<16x1xf32>
    %127 = arith.addf %123, %126 : vector<16x1xf32>
    %128 = math.rsqrt %127 : vector<16x1xf32>
    %129 = vector.broadcast %128 : vector<16x1xf32> to vector<16x32xf32>
    %130 = arith.mulf %125, %129 : vector<16x32xf32>
    %131 = vector.broadcast %110 : vector<1x32xf32> to vector<16x32xf32>
    %132 = arith.mulf %130, %131 : vector<16x32xf32>
    %133 = vector.broadcast %112 : vector<1x32xf32> to vector<16x32xf32>
    %134 = arith.addf %132, %133 : vector<16x32xf32>
    %c1 = arith.constant 1 : index
    %c0_66 = arith.constant 0 : index
    %c0_67 = arith.constant 0 : index
    %135 = vector.load %arg2[%c1, %c0_66, %c0_67] : memref<2x32x96xf32, #tpu.memory_space<vmem>>, vector<1x32x96xf32>
    %136 = vector.shape_cast %135 : vector<1x32x96xf32> to vector<32x96xf32>
    %cst_68 = arith.constant dense<0.000000e+00> : vector<16x96xf32>
    %137 = tpu.matmul %134, %136, %cst_68 {dimension_numbers = #tpu.dot_dimension_numbers<[1], [0], [0], [1], [0, 0, 1, 1], [], []>} : vector<16x32xf32>, vector<32x96xf32>, vector<16x96xf32> -> vector<16x96xf32>
    %c1_69 = arith.constant 1 : index
    %c0_70 = arith.constant 0 : index
    %c0_71 = arith.constant 0 : index
    %138 = vector.load %arg3[%c1_69, %c0_70, %c0_71] : memref<2x1x96xf32, #tpu.memory_space<vmem>>, vector<1x1x96xf32>
    %139 = vector.shape_cast %138 : vector<1x1x96xf32> to vector<1x96xf32>
    %140 = vector.broadcast %139 : vector<1x96xf32> to vector<16x96xf32>
    %141 = arith.addf %137, %140 : vector<16x96xf32>
    %142 = vector.extract_strided_slice %141 {offsets = [0, 0], sizes = [16, 32], strides = [1, 1]} : vector<16x96xf32> to vector<16x32xf32>
    %143 = vector.shape_cast %142 : vector<16x32xf32> to vector<2x8x32xf32>
    %144 = vector.extract_strided_slice %141 {offsets = [0, 32], sizes = [16, 32], strides = [1, 1]} : vector<16x96xf32> to vector<16x32xf32>
    %145 = vector.shape_cast %144 : vector<16x32xf32> to vector<2x8x32xf32>
    %146 = vector.extract_strided_slice %141 {offsets = [0, 64], sizes = [16, 32], strides = [1, 1]} : vector<16x96xf32> to vector<16x32xf32>
    %147 = vector.shape_cast %146 : vector<16x32xf32> to vector<2x8x32xf32>
    %c1_72 = arith.constant 1 : index
    %c0_73 = arith.constant 0 : index
    %c0_74 = arith.constant 0 : index
    %148 = vector.load %arg4[%c1_72, %c0_73, %c0_74] : memref<2x32x32xf32, #tpu.memory_space<vmem>>, vector<1x32x32xf32>
    %149 = vector.shape_cast %148 : vector<1x32x32xf32> to vector<32x32xf32>
    %cst_75 = arith.constant 0.000000e+00 : f32
    %150 = vector.broadcast %cst_75 : f32 to vector<16x32xf32>
    %151 = vector.extract_strided_slice %143 {offsets = [0, 0, 0], sizes = [2, 8, 16], strides = [1, 1, 1]} : vector<2x8x32xf32> to vector<2x8x16xf32>
    %152 = vector.extract_strided_slice %145 {offsets = [0, 0, 0], sizes = [2, 8, 16], strides = [1, 1, 1]} : vector<2x8x32xf32> to vector<2x8x16xf32>
    %153 = vector.extract_strided_slice %147 {offsets = [0, 0, 0], sizes = [2, 8, 16], strides = [1, 1, 1]} : vector<2x8x32xf32> to vector<2x8x16xf32>
    %cst_76 = arith.constant dense<0.000000e+00> : vector<2x8x8xf32>
    %154 = tpu.matmul %151, %152, %cst_76 {dimension_numbers = #tpu.dot_dimension_numbers<[2], [2], [1], [1], [0, 0, 0, 1, 1, 1], [0], [0]>} : vector<2x8x16xf32>, vector<2x8x16xf32>, vector<2x8x8xf32> -> vector<2x8x8xf32>
    %cst_77 = arith.constant -1.000000e+06 : f32
    %155 = vector.broadcast %cst_77 : f32 to vector<2x8x8xf32>
    %156 = arith.select %4, %154, %155 : vector<2x8x8xi1>, vector<2x8x8xf32>
    %cst_78 = arith.constant dense<0xFF800000> : vector<2x8xf32>
    %157 = vector.multi_reduction <maximumf>, %156, %cst_78 [2] : vector<2x8x8xf32> to vector<2x8xf32>
    %158 = vector.shape_cast %157 : vector<2x8xf32> to vector<2x8x1xf32>
    %159 = vector.broadcast %158 : vector<2x8x1xf32> to vector<2x8x8xf32>
    %160 = arith.subf %156, %159 : vector<2x8x8xf32>
    %161 = math.exp %160 : vector<2x8x8xf32>
    %cst_79 = arith.constant dense<0.000000e+00> : vector<2x8xf32>
    %162 = vector.multi_reduction <add>, %161, %cst_79 [2] : vector<2x8x8xf32> to vector<2x8xf32>
    %163 = vector.shape_cast %162 : vector<2x8xf32> to vector<2x8x1xf32>
    %164 = vector.broadcast %163 : vector<2x8x1xf32> to vector<2x8x8xf32>
    %165 = arith.divf %161, %164 : vector<2x8x8xf32>
    %cst_80 = arith.constant dense<0.000000e+00> : vector<2x8x16xf32>
    %166 = tpu.matmul %165, %153, %cst_80 {dimension_numbers = #tpu.dot_dimension_numbers<[2], [1], [1], [2], [0, 0, 0, 1, 1, 2], [0], [0]>} : vector<2x8x8xf32>, vector<2x8x16xf32>, vector<2x8x16xf32> -> vector<2x8x16xf32>
    %167 = vector.shape_cast %166 : vector<2x8x16xf32> to vector<16x16xf32>
    %168 = vector.extract_strided_slice %149 {offsets = [0, 0], sizes = [16, 32], strides = [1, 1]} : vector<32x32xf32> to vector<16x32xf32>
    %cst_81 = arith.constant dense<0.000000e+00> : vector<16x32xf32>
    %169 = tpu.matmul %167, %168, %cst_81 {dimension_numbers = #tpu.dot_dimension_numbers<[1], [0], [0], [1], [0, 0, 1, 1], [], []>} : vector<16x16xf32>, vector<16x32xf32>, vector<16x32xf32> -> vector<16x32xf32>
    %170 = arith.addf %150, %169 : vector<16x32xf32>
    %171 = vector.extract_strided_slice %143 {offsets = [0, 0, 16], sizes = [2, 8, 16], strides = [1, 1, 1]} : vector<2x8x32xf32> to vector<2x8x16xf32>
    %172 = vector.extract_strided_slice %145 {offsets = [0, 0, 16], sizes = [2, 8, 16], strides = [1, 1, 1]} : vector<2x8x32xf32> to vector<2x8x16xf32>
    %173 = vector.extract_strided_slice %147 {offsets = [0, 0, 16], sizes = [2, 8, 16], strides = [1, 1, 1]} : vector<2x8x32xf32> to vector<2x8x16xf32>
    %cst_82 = arith.constant dense<0.000000e+00> : vector<2x8x8xf32>
    %174 = tpu.matmul %171, %172, %cst_82 {dimension_numbers = #tpu.dot_dimension_numbers<[2], [2], [1], [1], [0, 0, 0, 1, 1, 1], [0], [0]>} : vector<2x8x16xf32>, vector<2x8x16xf32>, vector<2x8x8xf32> -> vector<2x8x8xf32>
    %cst_83 = arith.constant -1.000000e+06 : f32
    %175 = vector.broadcast %cst_83 : f32 to vector<2x8x8xf32>
    %176 = arith.select %4, %174, %175 : vector<2x8x8xi1>, vector<2x8x8xf32>
    %cst_84 = arith.constant dense<0xFF800000> : vector<2x8xf32>
    %177 = vector.multi_reduction <maximumf>, %176, %cst_84 [2] : vector<2x8x8xf32> to vector<2x8xf32>
    %178 = vector.shape_cast %177 : vector<2x8xf32> to vector<2x8x1xf32>
    %179 = vector.broadcast %178 : vector<2x8x1xf32> to vector<2x8x8xf32>
    %180 = arith.subf %176, %179 : vector<2x8x8xf32>
    %181 = math.exp %180 : vector<2x8x8xf32>
    %cst_85 = arith.constant dense<0.000000e+00> : vector<2x8xf32>
    %182 = vector.multi_reduction <add>, %181, %cst_85 [2] : vector<2x8x8xf32> to vector<2x8xf32>
    %183 = vector.shape_cast %182 : vector<2x8xf32> to vector<2x8x1xf32>
    %184 = vector.broadcast %183 : vector<2x8x1xf32> to vector<2x8x8xf32>
    %185 = arith.divf %181, %184 : vector<2x8x8xf32>
    %cst_86 = arith.constant dense<0.000000e+00> : vector<2x8x16xf32>
    %186 = tpu.matmul %185, %173, %cst_86 {dimension_numbers = #tpu.dot_dimension_numbers<[2], [1], [1], [2], [0, 0, 0, 1, 1, 2], [0], [0]>} : vector<2x8x8xf32>, vector<2x8x16xf32>, vector<2x8x16xf32> -> vector<2x8x16xf32>
    %187 = vector.shape_cast %186 : vector<2x8x16xf32> to vector<16x16xf32>
    %188 = vector.extract_strided_slice %149 {offsets = [16, 0], sizes = [16, 32], strides = [1, 1]} : vector<32x32xf32> to vector<16x32xf32>
    %cst_87 = arith.constant dense<0.000000e+00> : vector<16x32xf32>
    %189 = tpu.matmul %187, %188, %cst_87 {dimension_numbers = #tpu.dot_dimension_numbers<[1], [0], [0], [1], [0, 0, 1, 1], [], []>} : vector<16x16xf32>, vector<16x32xf32>, vector<16x32xf32> -> vector<16x32xf32>
    %190 = arith.addf %170, %189 : vector<16x32xf32>
    %c1_88 = arith.constant 1 : index
    %c0_89 = arith.constant 0 : index
    %c0_90 = arith.constant 0 : index
    %191 = vector.load %arg5[%c1_88, %c0_89, %c0_90] : memref<2x1x32xf32, #tpu.memory_space<vmem>>, vector<1x1x32xf32>
    %192 = vector.shape_cast %191 : vector<1x1x32xf32> to vector<1x32xf32>
    %193 = vector.broadcast %192 : vector<1x32xf32> to vector<16x32xf32>
    %194 = arith.addf %190, %193 : vector<16x32xf32>
    %195 = arith.addf %134, %194 : vector<16x32xf32>
    %c1_91 = arith.constant 1 : index
    %c0_92 = arith.constant 0 : index
    %c0_93 = arith.constant 0 : index
    %196 = vector.load %arg6[%c1_91, %c0_92, %c0_93] : memref<2x1x32xf32, #tpu.memory_space<vmem>>, vector<1x1x32xf32>
    %197 = vector.shape_cast %196 : vector<1x1x32xf32> to vector<1x32xf32>
    %c1_94 = arith.constant 1 : index
    %c0_95 = arith.constant 0 : index
    %c0_96 = arith.constant 0 : index
    %198 = vector.load %arg7[%c1_94, %c0_95, %c0_96] : memref<2x1x32xf32, #tpu.memory_space<vmem>>, vector<1x1x32xf32>
    %199 = vector.shape_cast %198 : vector<1x1x32xf32> to vector<1x32xf32>
    %cst_97 = arith.constant dense<0.000000e+00> : vector<16xf32>
    %200 = vector.multi_reduction <add>, %195, %cst_97 [1] : vector<16x32xf32> to vector<16xf32>
    %201 = vector.shape_cast %200 : vector<16xf32> to vector<16x1xf32>
    %cst_98 = arith.constant 3.200000e+01 : f32
    %202 = vector.broadcast %cst_98 : f32 to vector<16x1xf32>
    %203 = arith.divf %201, %202 : vector<16x1xf32>
    %204 = vector.broadcast %203 : vector<16x1xf32> to vector<16x32xf32>
    %205 = arith.subf %195, %204 : vector<16x32xf32>
    %206 = arith.mulf %205, %205 : vector<16x32xf32>
    %cst_99 = arith.constant dense<0.000000e+00> : vector<16xf32>
    %207 = vector.multi_reduction <add>, %206, %cst_99 [1] : vector<16x32xf32> to vector<16xf32>
    %208 = vector.shape_cast %207 : vector<16xf32> to vector<16x1xf32>
    %cst_100 = arith.constant 3.200000e+01 : f32
    %209 = vector.broadcast %cst_100 : f32 to vector<16x1xf32>
    %210 = arith.divf %208, %209 : vector<16x1xf32>
    %211 = vector.broadcast %203 : vector<16x1xf32> to vector<16x32xf32>
    %212 = arith.subf %195, %211 : vector<16x32xf32>
    %cst_101 = arith.constant 9.99999974E-6 : f32
    %213 = vector.broadcast %cst_101 : f32 to vector<16x1xf32>
    %214 = arith.addf %210, %213 : vector<16x1xf32>
    %215 = math.rsqrt %214 : vector<16x1xf32>
    %216 = vector.broadcast %215 : vector<16x1xf32> to vector<16x32xf32>
    %217 = arith.mulf %212, %216 : vector<16x32xf32>
    %218 = vector.broadcast %197 : vector<1x32xf32> to vector<16x32xf32>
    %219 = arith.mulf %217, %218 : vector<16x32xf32>
    %220 = vector.broadcast %199 : vector<1x32xf32> to vector<16x32xf32>
    %221 = arith.addf %219, %220 : vector<16x32xf32>
    %c1_102 = arith.constant 1 : index
    %c0_103 = arith.constant 0 : index
    %c0_104 = arith.constant 0 : index
    %222 = vector.load %arg8[%c1_102, %c0_103, %c0_104] : memref<2x32x64xf32, #tpu.memory_space<vmem>>, vector<1x32x64xf32>
    %223 = vector.shape_cast %222 : vector<1x32x64xf32> to vector<32x64xf32>
    %cst_105 = arith.constant dense<0.000000e+00> : vector<16x64xf32>
    %224 = tpu.matmul %221, %223, %cst_105 {dimension_numbers = #tpu.dot_dimension_numbers<[1], [0], [0], [1], [0, 0, 1, 1], [], []>} : vector<16x32xf32>, vector<32x64xf32>, vector<16x64xf32> -> vector<16x64xf32>
    %c1_106 = arith.constant 1 : index
    %c0_107 = arith.constant 0 : index
    %c0_108 = arith.constant 0 : index
    %225 = vector.load %arg9[%c1_106, %c0_107, %c0_108] : memref<2x1x64xf32, #tpu.memory_space<vmem>>, vector<1x1x64xf32>
    %226 = vector.shape_cast %225 : vector<1x1x64xf32> to vector<1x64xf32>
    %227 = vector.broadcast %226 : vector<1x64xf32> to vector<16x64xf32>
    %228 = arith.addf %224, %227 : vector<16x64xf32>
    %cst_109 = arith.constant 0.000000e+00 : f32
    %229 = vector.broadcast %cst_109 : f32 to vector<16x64xf32>
    %230 = arith.maximumf %228, %229 : vector<16x64xf32>
    %c1_110 = arith.constant 1 : index
    %c0_111 = arith.constant 0 : index
    %c0_112 = arith.constant 0 : index
    %231 = vector.load %arg10[%c1_110, %c0_111, %c0_112] : memref<2x64x32xf32, #tpu.memory_space<vmem>>, vector<1x64x32xf32>
    %232 = vector.shape_cast %231 : vector<1x64x32xf32> to vector<64x32xf32>
    %cst_113 = arith.constant dense<0.000000e+00> : vector<16x32xf32>
    %233 = tpu.matmul %230, %232, %cst_113 {dimension_numbers = #tpu.dot_dimension_numbers<[1], [0], [0], [1], [0, 0, 1, 1], [], []>} : vector<16x64xf32>, vector<64x32xf32>, vector<16x32xf32> -> vector<16x32xf32>
    %c1_114 = arith.constant 1 : index
    %c0_115 = arith.constant 0 : index
    %c0_116 = arith.constant 0 : index
    %234 = vector.load %arg11[%c1_114, %c0_115, %c0_116] : memref<2x1x32xf32, #tpu.memory_space<vmem>>, vector<1x1x32xf32>
    %235 = vector.shape_cast %234 : vector<1x1x32xf32> to vector<1x32xf32>
    %236 = vector.broadcast %235 : vector<1x32xf32> to vector<16x32xf32>
    %237 = arith.addf %233, %236 : vector<16x32xf32>
    %238 = arith.addf %221, %237 : vector<16x32xf32>
    %c1_117 = arith.constant 1 : index
    %c0_118 = arith.constant 0 : index
    %c0_119 = arith.constant 0 : index
    %239 = vector.load %arg12[%c1_117, %c0_118, %c0_119] : memref<2x1x32xf32, #tpu.memory_space<vmem>>, vector<1x1x32xf32>
    %240 = vector.shape_cast %239 : vector<1x1x32xf32> to vector<1x32xf32>
    %c1_120 = arith.constant 1 : index
    %c0_121 = arith.constant 0 : index
    %c0_122 = arith.constant 0 : index
    %241 = vector.load %arg13[%c1_120, %c0_121, %c0_122] : memref<2x1x32xf32, #tpu.memory_space<vmem>>, vector<1x1x32xf32>
    %242 = vector.shape_cast %241 : vector<1x1x32xf32> to vector<1x32xf32>
    %cst_123 = arith.constant dense<0.000000e+00> : vector<16xf32>
    %243 = vector.multi_reduction <add>, %238, %cst_123 [1] : vector<16x32xf32> to vector<16xf32>
    %244 = vector.shape_cast %243 : vector<16xf32> to vector<16x1xf32>
    %cst_124 = arith.constant 3.200000e+01 : f32
    %245 = vector.broadcast %cst_124 : f32 to vector<16x1xf32>
    %246 = arith.divf %244, %245 : vector<16x1xf32>
    %247 = vector.broadcast %246 : vector<16x1xf32> to vector<16x32xf32>
    %248 = arith.subf %238, %247 : vector<16x32xf32>
    %249 = arith.mulf %248, %248 : vector<16x32xf32>
    %cst_125 = arith.constant dense<0.000000e+00> : vector<16xf32>
    %250 = vector.multi_reduction <add>, %249, %cst_125 [1] : vector<16x32xf32> to vector<16xf32>
    %251 = vector.shape_cast %250 : vector<16xf32> to vector<16x1xf32>
    %cst_126 = arith.constant 3.200000e+01 : f32
    %252 = vector.broadcast %cst_126 : f32 to vector<16x1xf32>
    %253 = arith.divf %251, %252 : vector<16x1xf32>
    %254 = vector.broadcast %246 : vector<16x1xf32> to vector<16x32xf32>
    %255 = arith.subf %238, %254 : vector<16x32xf32>
    %cst_127 = arith.constant 9.99999974E-6 : f32
    %256 = vector.broadcast %cst_127 : f32 to vector<16x1xf32>
    %257 = arith.addf %253, %256 : vector<16x1xf32>
    %258 = math.rsqrt %257 : vector<16x1xf32>
    %259 = vector.broadcast %258 : vector<16x1xf32> to vector<16x32xf32>
    %260 = arith.mulf %255, %259 : vector<16x32xf32>
    %261 = vector.broadcast %240 : vector<1x32xf32> to vector<16x32xf32>
    %262 = arith.mulf %260, %261 : vector<16x32xf32>
    %263 = vector.broadcast %242 : vector<1x32xf32> to vector<16x32xf32>
    %264 = arith.addf %262, %263 : vector<16x32xf32>
    %c0_128 = arith.constant 0 : index
    %c0_129 = arith.constant 0 : index
    %265 = vector.load %arg14[%c0_128, %c0_129] : memref<32x256xf32, #tpu.memory_space<vmem>>, vector<32x256xf32>
    %cst_130 = arith.constant dense<0.000000e+00> : vector<16x256xf32>
    %266 = tpu.matmul %264, %265, %cst_130 {dimension_numbers = #tpu.dot_dimension_numbers<[1], [0], [0], [1], [0, 0, 1, 1], [], []>} : vector<16x32xf32>, vector<32x256xf32>, vector<16x256xf32> -> vector<16x256xf32>
    %c0_131 = arith.constant 0 : index
    %c0_132 = arith.constant 0 : index
    %267 = vector.load %arg15[%c0_131, %c0_132] : memref<1x256xf32, #tpu.memory_space<vmem>>, vector<1x256xf32>
    %268 = vector.broadcast %267 : vector<1x256xf32> to vector<16x256xf32>
    %269 = arith.addf %266, %268 : vector<16x256xf32>
    %270 = math.tanh %269 : vector<16x256xf32>
    %c0_133 = arith.constant 0 : index
    %c0_134 = arith.constant 0 : index
    %271 = vector.load %arg16[%c0_133, %c0_134] : memref<256x128xf32, #tpu.memory_space<vmem>>, vector<256x128xf32>
    %cst_135 = arith.constant dense<0.000000e+00> : vector<16x128xf32>
    %272 = tpu.matmul %270, %271, %cst_135 {dimension_numbers = #tpu.dot_dimension_numbers<[1], [0], [0], [1], [0, 0, 1, 1], [], []>} : vector<16x256xf32>, vector<256x128xf32>, vector<16x128xf32> -> vector<16x128xf32>
    %c0_136 = arith.constant 0 : index
    %c0_137 = arith.constant 0 : index
    %273 = vector.load %arg17[%c0_136, %c0_137] : memref<1x128xf32, #tpu.memory_space<vmem>>, vector<1x128xf32>
    %274 = vector.broadcast %273 : vector<1x128xf32> to vector<16x128xf32>
    %275 = arith.addf %272, %274 : vector<16x128xf32>
    %c0_138 = arith.constant 0 : index
    %c0_139 = arith.constant 0 : index
    %276 = vector.load %arg18[%c0_138, %c0_139] : memref<16x128xf32, #tpu.memory_space<vmem>>, vector<16x128xf32>
    tpu.vector_store %arg18[%c0_138, %c0_139], %275 {strides = array<i32>} : memref<16x128xf32, #tpu.memory_space<vmem>>, vector<16x128xf32>,
    return
  }
}

</mosaic_0001>

<bundles_post_ra>
// kernel: bert_classifier_forward.1
= control target key start
LH: loop header
LB: loop body
LE: loop exit
PB: predicated region body
PF: predicated region fallthrough
CT: control target
= control target key end

     0   :  { %vm83_vm0 = vcmask 261120   ;;  %s1667_s30 = smov 80   ;;  %s1669_s19 = smov 112   ;;  %v1670_v12 = vmov 0   ;;  %vm120_vm1 = vcmask 130048   ;;  %v61_v20 = vlaneseq  ;;  %s2307_s2 = inlined_call_operand.vmem [shape: f32[2,32,96], index: 2, kind: input, shape index: {}]   ;;  %s2308_s3 = inlined_call_operand.vmem [shape: f32[2,1,96], index: 3, kind: input, shape index: {}]   ;;  %s2309_s0 = inlined_call_operand.vmem [shape: f32[16,32], index: 0, kind: input, shape index: {}]   ;;  %s2310_s1 = inlined_call_operand.vmem [shape: s32[2,1,1], index: 1, kind: input, shape index: {}]   ;;  %s2311_s4 = inlined_call_operand.vmem [shape: f32[2,32,32], index: 4, kind: input, shape index: {}]   ;;  %s2312_s5 = inlined_call_operand.vmem [shape: f32[2,1,32], index: 5, kind: input, shape index: {}]   ;;  %s2313_s6 = inlined_call_operand.vmem [shape: f32[2,1,32], index: 6, kind: input, shape index: {}]   ;;  %s2314_s7 = inlined_call_operand.vmem [shape: f32[2,1,32], index: 7, kind: input, shape index: {}]   ;;  %s2315_s9 = inlined_call_operand.vmem [shape: f32[2,1,64], index: 9, kind: input, shape index: {}]   ;;  %s2316_s8 = inlined_call_operand.vmem [shape: f32[2,32,64], index: 8, kind: input, shape index: {}]   ;;  %s2317_s10 = inlined_call_operand.vmem [shape: f32[2,64,32], index: 10, kind: input, shape index: {}]   ;;  %s2318_s11 = inlined_call_operand.vmem [shape: f32[2,1,32], index: 11, kind: input, shape index: {}]   ;;  %s2319_s12 = inlined_call_operand.vmem [shape: f32[2,1,32], index: 12, kind: input, shape index: {}]   ;;  %s2320_s13 = inlined_call_operand.vmem [shape: f32[2,1,32], index: 13, kind: input, shape index: {}]   ;;  %s2321_s14 = inlined_call_operand.vmem [shape: f32[32,256], index: 14, kind: input, shape index: {}]   ;;  %s2322_s16 = inlined_call_operand.vmem [shape: f32[256,128], index: 16, kind: input, shape index: {}]   ;;  %s2323_s17 = inlined_call_operand.vmem [shape: f32[1,128], index: 17, kind: input, shape index: {}]   ;;  %s2324_s15 = inlined_call_operand.vmem [shape: f32[1,256], index: 15, kind: input, shape index: {}]   ;;  %s2325_s18 = inlined_call_operand.vmem [shape: f32[16,128], index: 18, kind: output, shape index: {}]  }
   0x1   :  { %2329 = sst [smem:[#allocation2_spill]] %s2307_s2  ;;  %s1668_s2 = smov 96   ;;  %v1591_v11 = vld [vmem:[%s2310_s1] ss:$0 sm:$0xff]  ;;  %1573 = vset.pattern.permute.xlu0 %v1670_v12  ;;  %1574 = vset.pattern.permute.xlu1 %v1670_v12  ;;  %v1592_v13 = vld [vmem:[%s2310_s1 + $0x1] ss:$0 sm:$0xff] }
   0x2   :  { %2330 = sst [smem:[#allocation3_spill]] %s2308_s3  ;;  %v1830_v21 = vand.u32 127, %v61_v20  ;;  %vm174_vm3 = vcmask 64512   ;;  %s1671_s1 = smov 64  }
   0x3   :  { %2331 = sst [smem:[#allocation4_spill]] %s2309_s0  ;;  %s1672_s0 = smov 48  }
   0x4   :  { %s2332_s29 = sld [smem:[#allocation2_spill]] }
   0x5   :  { %s2333_s23 = sld [smem:[#allocation4_spill]] }
   0x6   :  { %s2334_s28 = sld [smem:[#allocation3_spill]] }
   0xa   :  { %v78_v0 = vld [vmem:[%s2332_s29 + $0x18] sm:$0xff]  ;;  %v77_v1 = vld [vmem:[%s2332_s29 + $0x10] sm:$0xff]  ;;  %v76_v2 = vld [vmem:[%s2332_s29 + $0x8] sm:$0xff] }
   0xb   :  { %102 = vmatpush.msra.mxu0 %v78_v0  ;;  %1562 = vmatpush.msra.mxu2 %v78_v0  ;;  %v75_v3 = vld [vmem:[%s2332_s29] sm:$0xff]  ;;  %v1789_v5 = vld [vmem:[%s2333_s23 + $0x8] sm:$0xff] }
   0xc   :  { %v1784_v4 = vld [vmem:[%s2333_s23] sm:$0xff] }
   0xd   :  { %103 = vmatpush.msra.mxu0 %v77_v1  ;;  %1563 = vmatpush.msra.mxu2 %v77_v1  ;;  %v1590_v6 = vld [vmem:[%s2334_s28] ss:$0 sm:$0xff] }
   0xf   :  { %104 = vmatpush.msra.mxu0 %v76_v2  ;;  %1564 = vmatpush.msra.mxu2 %v76_v2 }
  0x11   :  { %105 = vmatpush.msra.mxu0 %v75_v3  ;;  %1565 = vmatpush.msra.mxu2 %v75_v3 }
  0x12   :  { %1486 = vmatmul.msk.f32.vlgmr.msra.gmra.mxu0 %vm83_vm0, %v1784_v4  ;;  %1487 = vmatmul.msk.f32.vlgmr.msra.gmra.mxu2 %vm83_vm0, %v1789_v5 }
  0x8f   :  { %v107_v7 = vpop.f32.mrf.mxu0 }
  0x90   :  { %v1798_v8 = vadd.f32 %v1590_v6, %v107_v7 }
  0x92   :  { %277 = vrot.lane.b32.xlu1 %v1798_v8, %s1667_s30  ;;  %118 = vrot.lane.b32.xlu0 %v1798_v8, %s1668_s2 }
  0x95   :  { %v110_v9 = vpop.f32.mrf.mxu2 }
  0x96   :  { %v1804_v10 = vadd.f32 %v1590_v6, %v110_v9 }
  0x98   :  { %305 = vrot.lane.b32.xlu2 %v1804_v10, %s1667_s30  ;;  %v1575_v36 = vpack.i.bf16 %v1804_v10, %v1798_v8 }
  0x9a   :  { %275 = vrot.lane.b32.xlu1 %v1798_v8, %s1669_s19  ;;  %146 = vrot.lane.b32.xlu0 %v1804_v10, %s1668_s2 }
  0xa0   :  { %303 = vrot.lane.b32.xlu2 %v1804_v10, %s1669_s19 }
  0xa2   :  { %68 = vperm.xlu0 %1573, %v1591_v11   ;;  %71 = vperm.xlu1 %1574, %v1592_v13  }
  0xf2   :  { %v306_v17 = vpop.permute.xlu2 %305 }
  0xfa   :  { %v304_v19 = vpop.permute.xlu2 %303 }
 0x104   :  { %v278_v14 = vpop.permute.xlu1 %277  ;;  %v119_v15 = vpop.permute.xlu0 %118 }
 0x105   :  { %1488 = vmatpush.xpose.msk.msra.mxu1 %vm120_vm1, %v119_v15 }
 0x108   :  { %1489 = vmatmul.msk.f32.vlgmr.msra.gmra.mxu1 %vm120_vm1, %v1798_v8 }
 0x109   :  { %1494 = vmatpush.xpose.msk.msrb.mxu1 %vm120_vm1, %v278_v14 }
 0x10c   :  { %v147_v16 = vpop.permute.xlu0 %146  ;;  %v276_v18 = vpop.permute.xlu1 %275 }
 0x10d   :  { %1490 = vmatpush.xpose.msk.msrb.mxu2 %vm120_vm1, %v147_v16 }
 0x110   :  { %1491 = vmatmul.msk.f32.vlgmr.msrb.gmra.mxu2 %vm120_vm1, %v1804_v10  ;;  %1495 = vmatmul.msk.f32.vlgmr.msrb.gmra.mxu1 %vm120_vm1, %v276_v18 }
 0x111   :  { %1496 = vmatpush.xpose.msk.msra.mxu2 %vm120_vm1, %v306_v17 }
 0x114   :  { %v1832_v22 = vpop.permute.xlu0 %68  ;;  %v1843_v28 = vpop.permute.xlu1 %71 }
 0x115   :  { %vm73_vm2 = vcmp.lt.s32.totalorder %v1830_v21, %v1832_v22  ;;  %vm74_vm4 = vcmp.lt.s32.totalorder %v1830_v21, %v1843_v28 }
 0x118   :  { %1497 = vmatmul.msk.f32.vlgmr.msra.gmra.mxu2 %vm120_vm1, %v304_v19 }
 0x185   :  { %v142_v23 = vpop.f32.mrf.mxu1 }
 0x186   :  { %v172_v24 = vsel %vm73_vm2, %v142_v23, -1000000.0 }
 0x187   :  { %v175_v25 = vsel %vm174_vm3, %v172_v24, -inf }
 0x188   :  { %176 = vmax.xlane.f32.xlu2 %v175_v25 }
 0x18d   :  { %v300_v26 = vpop.f32.mrf.mxu1 }
 0x18e   :  { %v331_v27 = vsel %vm73_vm2, %v300_v26, -1000000.0 }
 0x18f   :  { %v333_v29 = vsel %vm174_vm3, %v331_v27, -inf }
 0x190   :  { %334 = vmax.xlane.f32.xlu0 %v333_v29 }
 0x193   :  { %v169_v30 = vpop.f32.mrf.mxu2 }
 0x194   :  { %v173_v31 = vsel %vm74_vm4, %v169_v30, -1000000.0 }
 0x195   :  { %v178_v32 = vsel %vm174_vm3, %v173_v31, -inf }
 0x196   :  { %179 = vmax.xlane.f32.xlu1 %v178_v32 }
 0x19b   :  { %v328_v33 = vpop.f32.mrf.mxu2 }
 0x19c   :  { %v332_v34 = vsel %vm74_vm4, %v328_v33, -1000000.0 }
 0x19d   :  { %v336_v35 = vsel %vm174_vm3, %v332_v34, -inf }
 0x19e   :  { %337 = vmax.xlane.f32.xlu2 %v336_v35 }
 0x1a4   :  { %1576 = vrot.lane.b32.xlu0 %v1575_v36, %s1671_s1 }
 0x1fb   :  { %v177_v37 = vpop.xlane.xlu2 %176 }
 0x1fc   :  { %v181_v38 = vsub.f32 %v172_v24, %v177_v37 }
 0x1fe   :  { %v183_v39 = vmul.f32 1.442695, %v181_v38 }
 0x200   :  { %1609 = vpow2.f32 %v183_v39 }
 0x203   :  { %v335_v40 = vpop.xlane.xlu0 %334 }
 0x204   :  { %v339_v41 = vsub.f32 %v331_v27, %v335_v40 }
 0x206   :  { %v1610_v42 = vpop.eup %1609  ;;  %v341_v43 = vmul.f32 1.442695, %v339_v41 }
 0x207   :  { %v187_v44 = vsel %vm174_vm3, %v1610_v42, 0.0 }
 0x208   :  { %1611 = vpow2.f32 %v341_v43  ;;  %188 = vadd.xlane.f32.xlu2 %v187_v44 }
 0x209   :  { %v180_v45 = vpop.xlane.xlu1 %179 }
 0x20a   :  { %v182_v46 = vsub.f32 %v173_v31, %v180_v45 }
 0x20c   :  { %v185_v47 = vmul.f32 1.442695, %v182_v46 }
 0x20e   :  { %v1860_v48 = vpop.eup %1611  ;;  %1613 = vpow2.f32 %v185_v47 }
 0x20f   :  { %v345_v49 = vsel %vm174_vm3, %v1860_v48, 0.0 }
 0x210   :  { %346 = vadd.xlane.f32.xlu2 %v345_v49 }
 0x211   :  { %v338_v50 = vpop.xlane.xlu2 %337 }
 0x212   :  { %v340_v51 = vsub.f32 %v332_v34, %v338_v50 }
 0x214   :  { %v1864_v52 = vpop.eup %1613  ;;  %v343_v53 = vmul.f32 1.442695, %v340_v51 }
 0x215   :  { %v190_v54 = vsel %vm174_vm3, %v1864_v52, 0.0 }
 0x216   :  { %1615 = vpow2.f32 %v343_v53  ;;  %191 = vadd.xlane.f32.xlu1 %v190_v54  ;;  %v1577_v55 = vpop.permute.xlu0 %1576  ;;  %v113_v53 = vld [vmem:[%s2311_s4] sm:$0xff]  ;;  %v115_v54 = vld [vmem:[%s2311_s4 + $0x10] sm:$0xff] }
 0x217   :  { %v1578_v56 = vunpack.i.l.bf16 %v1577_v55  ;;  %v1579_v57 = vunpack.i.h.bf16 %v1577_v55 }
 0x219   :  { %244 = vmatpush.msra.mxu3 %v1578_v56 }
 0x21b   :  { %270 = vmatpush.msrb.mxu3 %v1579_v57 }
 0x21c   :  { %v1868_v58 = vpop.eup %1615 }
 0x21d   :  { %v348_v59 = vsel %vm174_vm3, %v1868_v58, 0.0 }
 0x21e   :  { %349 = vadd.xlane.f32.xlu1 %v348_v59  ;;  %v1593_v59 = vld [vmem:[%s2312_s5] ss:$0 sm:$0xff] }
 0x228   :  { %381 = vrot.lane.b32.xlu2 %v1798_v8, %s1672_s0 }
 0x237   :  { %407 = vrot.lane.b32.xlu1 %v1804_v10, %s1672_s0  ;;  %v114_v10 = vld [vmem:[%s2311_s4 + $0x8] sm:$0xff] }
 0x238   :  { %482 = vmatpush.msrb.mxu0 %v114_v10 }
 0x23a   :  { %483 = vmatpush.msrb.mxu0 %v113_v53 }
 0x27b   :  { %v189_v60 = vpop.xlane.xlu2 %188 }
 0x27c   :  { %1617 = vrcp.f32 %v189_v60  ;;  %v204_v1 = vand.u32 2147483648, %v189_v60  ;;  %v202_v3 = vand.u32 2147483647, %v189_v60  ;;  %vm198_vm6 = vweird.f32 %v189_v60 }
 0x27e   :  { %v205_v11 = vor.u32 1.1754944e-38, %v204_v1  ;;  %vm203_vm8 = vcmp.eq.f32.partialorder %v202_v3, 8.507059e+37 }
 0x282   :  { %v1618_v61 = vpop.eup %1617 }
 0x283   :  { %v194_v62 = vmul.f32 %v1618_v61, %v189_v60  ;;  %v347_v63 = vpop.xlane.xlu2 %346  ;;  %vm199_vm5 = vweird.f32 %v1618_v61 }
 0x284   :  { %1619 = vrcp.f32 %v347_v63  ;;  %vm200_vm7 = vmor %vm198_vm6, %vm199_vm5  ;;  %v362_v34 = vand.u32 2147483648, %v347_v63  ;;  %vm356_vm14 = vweird.f32 %v347_v63  ;;  %v360_v36 = vand.u32 2147483647, %v347_v63 }
 0x285   :  { %v195_v0 = vsub.f32 1.0, %v194_v62 }
 0x286   :  { %v363_v41 = vor.u32 1.1754944e-38, %v362_v34  ;;  %vm361_vm5 = vcmp.eq.f32.partialorder %v360_v36, 8.507059e+37  ;;  %v607_v36 = vld [vmem:[%s2317_s10 + $0x30] sm:$0xff] }
 0x287   :  { %v196_v2 = vmul.f32 %v1618_v61, %v195_v0 }
 0x289   :  { %v192_v6 = vpop.xlane.xlu1 %191  ;;  %v197_v7 = vadd.f32 %v1618_v61, %v196_v2 }
 0x28a   :  { %v1620_v9 = vpop.eup %1619  ;;  %1621 = vrcp.f32 %v192_v6  ;;  %v219_v23 = vand.u32 2147483648, %v192_v6  ;;  %v217_v26 = vand.u32 2147483647, %v192_v6  ;;  %vm213_vm10 = vweird.f32 %v192_v6 }
 0x28b   :  { %v201_v8 = vsel %vm200_vm7, %v1618_v61, %v197_v7  ;;  %v352_v13 = vmul.f32 %v1620_v9, %v347_v63  ;;  %v382_v15 = vpop.permute.xlu2 %381  ;;  %vm357_vm11 = vweird.f32 %v1620_v9 }
 0x28c   :  { %v206_v12 = vsel %vm203_vm8, %v205_v11, %v201_v8  ;;  %v220_v30 = vor.u32 1.1754944e-38, %v219_v23  ;;  %vm218_vm13 = vcmp.eq.f32.partialorder %v217_v26, 8.507059e+37  ;;  %vm358_vm15 = vmor %vm356_vm14, %vm357_vm11  ;;  %v1673_v8 = vmov 32.0  }
 0x28d   :  { %v207_v14 = vmul.f32 %v1610_v42, %v206_v12  ;;  %v353_v17 = vsub.f32 1.0, %v352_v13 }
 0x28f   :  { %1492 = vmatmul.msk.f32.vlgmr.msra.gmra.mxu3 %vm174_vm3, %v207_v14  ;;  %v354_v24 = vmul.f32 %v1620_v9, %v353_v17 }
 0x290   :  { %v1622_v16 = vpop.eup %1621  ;;  %402 = vmatpush.msra.mxu3 %v382_v15 }
 0x291   :  { %v209_v18 = vmul.f32 %v1622_v16, %v192_v6  ;;  %v350_v19 = vpop.xlane.xlu1 %349  ;;  %vm214_vm9 = vweird.f32 %v1622_v16  ;;  %v355_v31 = vadd.f32 %v1620_v9, %v354_v24 }
 0x292   :  { %1623 = vrcp.f32 %v350_v19  ;;  %vm215_vm12 = vmor %vm213_vm10, %vm214_vm9  ;;  %v377_v44 = vand.u32 2147483648, %v350_v19  ;;  %vm371_vm7 = vweird.f32 %v350_v19  ;;  %v375_v45 = vand.u32 2147483647, %v350_v19 }
 0x293   :  { %v210_v20 = vsub.f32 1.0, %v209_v18  ;;  %v359_v39 = vsel %vm358_vm15, %v1620_v9, %v355_v31  ;;  %1625 = vrcp.f32 %v1673_v8  ;;  %v562_v31 = vld [vmem:[%s2316_s8] sm:$0xff] }
 0x294   :  { %v364_v43 = vsel %vm361_vm5, %v363_v41, %v359_v39  ;;  %v378_v49 = vor.u32 1.1754944e-38, %v377_v44  ;;  %vm376_vm9 = vcmp.eq.f32.partialorder %v375_v45, 8.507059e+37 }
 0x295   :  { %v211_v25 = vmul.f32 %v1622_v16, %v210_v20  ;;  %v365_v47 = vmul.f32 %v1860_v48, %v364_v43  ;;  %v116_v48 = vld [vmem:[%s2311_s4 + $0x18] sm:$0xff] }
 0x296   :  { %453 = vmatpush.msrb.mxu2 %v116_v48  ;;  %v604_v43 = vld [vmem:[%s2317_s10 + $0x18] sm:$0xff] }
 0x297   :  { %v212_v27 = vadd.f32 %v1622_v16, %v211_v25 }
 0x298   :  { %v1624_v29 = vpop.eup %1623  ;;  %454 = vmatpush.msrb.mxu2 %v115_v54 }
 0x299   :  { %v367_v32 = vmul.f32 %v1624_v29, %v350_v19  ;;  %v216_v33 = vsel %vm215_vm12, %v1622_v16, %v212_v27  ;;  %vm372_vm6 = vweird.f32 %v1624_v29  ;;  %v1626_v10 = vpop.eup %1625  ;;  %v565_v27 = vld [vmem:[%s2316_s8 + $0x18] sm:$0xff] }
 0x29a   :  { %v221_v35 = vsel %vm218_vm13, %v220_v30, %v216_v33  ;;  %vm373_vm8 = vmor %vm371_vm7, %vm372_vm6  ;;  %v508_v12 = vmul.f32 32.0, %v1626_v10  ;;  %vm512_vm10 = vweird.f32 %v1626_v10  ;;  %v563_v30 = vld [vmem:[%s2316_s8 + $0x8] sm:$0xff]  ;;  %vm613_vm6 = vcmask 523264  }
 0x29b   :  { %v368_v37 = vsub.f32 1.0, %v367_v32  ;;  %v222_v38 = vmul.f32 %v1864_v52, %v221_v35  ;;  %v608_v35 = vld [vmem:[%s2317_s10 + $0x38] sm:$0xff] }
 0x29c   :  { %v509_v13 = vsub.f32 1.0, %v508_v12 }
 0x29d   :  { %v369_v40 = vmul.f32 %v1624_v29, %v368_v37  ;;  %1493 = vmatmul.msk.f32.vlgmr.msrb.gmra.mxu3 %vm174_vm3, %v222_v38  ;;  %v606_v37 = vld [vmem:[%s2317_s10 + $0x28] sm:$0xff] }
 0x29e   :  { %v510_v14 = vmul.f32 %v1626_v10, %v509_v13  ;;  %v1597_v13 = vld [vmem:[%s2318_s11] ss:$0 sm:$0xff] }
 0x29f   :  { %v370_v42 = vadd.f32 %v1624_v29, %v369_v40  ;;  %v605_v40 = vld [vmem:[%s2317_s10 + $0x20] sm:$0xff] }
 0x2a0   :  { %v511_v15 = vadd.f32 %v1626_v10, %v510_v14 }
 0x2a1   :  { %v374_v46 = vsel %vm373_vm8, %v1624_v29, %v370_v42  ;;  %v564_v29 = vld [vmem:[%s2316_s8 + $0x10] sm:$0xff] }
 0x2a2   :  { %v379_v50 = vsel %vm376_vm9, %v378_v49, %v374_v46 }
 0x2a3   :  { %v380_v52 = vmul.f32 %v1868_v58, %v379_v50 }
 0x2a5   :  { %1498 = vmatmul.msk.f32.vlgmr.msra.gmra.mxu3 %vm174_vm3, %v365_v47 }
 0x2a9   :  { %v408_v51 = vpop.permute.xlu1 %407 }
 0x2aa   :  { %428 = vmatpush.msra.mxu1 %v408_v51 }
 0x2ab   :  { %1499 = vmatmul.msk.f32.vlgmr.msra.gmra.mxu1 %vm174_vm3, %v380_v52  ;;  %v1594_v52 = vld [vmem:[%s2313_s6] ss:$0 sm:$0xff] }
 0x2ac   :  { %588 = vmatpush.msrb.mxu1 %v565_v27 }
 0x2ae   :  { %589 = vmatpush.msrb.mxu1 %v564_v29 }
 0x2b0   :  { %590 = vmatpush.msrb.mxu1 %v563_v30 }
 0x2b2   :  { %591 = vmatpush.msrb.mxu1 %v562_v31 }
 0x2b4   :  { %628 = vmatpush.msra.mxu1 %v608_v35  ;;  %v1510_v35 = vld [vmem:[%s2332_s29 + $0x30] sm:$0xff] }
 0x2b6   :  { %629 = vmatpush.msra.mxu1 %v607_v36  ;;  %v1509_v36 = vld [vmem:[%s2332_s29 + $0x28] sm:$0xff] }
 0x2b8   :  { %630 = vmatpush.msra.mxu1 %v606_v37  ;;  %v1508_v37 = vld [vmem:[%s2332_s29 + $0x20] sm:$0xff] }
 0x2ba   :  { %631 = vmatpush.msra.mxu1 %v605_v40 }
 0x2bc   :  { %632 = vmatpush.msra.mxu1 %v604_v43 }
 0x312   :  { %v246_v55 = vpop.f32.mrf.mxu3 }
 0x313   :  { %1502 = vmatmul.msk.f32.vlgmr.msrb.gmra.mxu0 %vm120_vm1, %v246_v55  ;;  %v1595_v55 = vld [vmem:[%s2314_s7] ss:$0 sm:$0xff] }
 0x320   :  { %v272_v56 = vpop.f32.mrf.mxu3 }
 0x321   :  { %1503 = vmatmul.msk.f32.gmra.mxu0 %vm120_vm1, %v272_v56 }
 0x328   :  { %v404_v57 = vpop.f32.mrf.mxu3  ;;  %v430_v58 = vpop.f32.mrf.mxu1 }
 0x329   :  { %1500 = vmatmul.msk.f32.vlgmr.msrb.gmra.mxu2 %vm120_vm1, %v404_v57 }
 0x331   :  { %1501 = vmatmul.msk.f32.gmra.mxu2 %vm120_vm1, %v430_v58 }
 0x390   :  { %v485_v60 = vpop.f32.mrf.mxu0 }
 0x39e   :  { %v488_v2 = vpop.f32.mrf.mxu0 }
 0x3ac   :  { %v456_v61 = vpop.f32.mrf.mxu2 }
 0x3ad   :  { %v486_v62 = vadd.f32 %v485_v60, %v456_v61 }
 0x3af   :  { %v495_v63 = vadd.f32 %v1593_v59, %v486_v62 }
 0x3b1   :  { %v497_v0 = vadd.f32 %v495_v63, %v1784_v4  ;;  %v1906_v4 = vsel %vm512_vm10, %v1626_v10, %v511_v15 }
 0x3b3   :  { %v501_v1 = vsel %vm83_vm0, %v497_v0, 0.0 }
 0x3b4   :  { %502 = vadd.xlane.f32.xlu0 %v501_v1  ;;  %v459_v3 = vpop.f32.mrf.mxu2  ;;  %v603_v1 = vld [vmem:[%s2317_s10 + $0x10] sm:$0xff] }
 0x3b5   :  { %v489_v6 = vadd.f32 %v488_v2, %v459_v3  ;;  %633 = vmatpush.msra.mxu1 %v603_v1  ;;  %v602_v2 = vld [vmem:[%s2317_s10 + $0x8] sm:$0xff]  ;;  %v601_v3 = vld [vmem:[%s2317_s10] sm:$0xff] }
 0x3b7   :  { %v496_v7 = vadd.f32 %v1593_v59, %v489_v6  ;;  %634 = vmatpush.msra.mxu1 %v602_v2  ;;  %v1596_v6 = vld [vmem:[%s2315_s9] ss:$0 sm:$0xff]  ;;  %v1600_v2 = vld [vmem:[%s2334_s28 + $0x1] ss:$0 sm:$0xff] }
 0x3b9   :  { %v498_v9 = vadd.f32 %v496_v7, %v1789_v5  ;;  %635 = vmatpush.msra.mxu1 %v601_v3 }
 0x3bb   :  { %v504_v11 = vsel %vm83_vm0, %v498_v9, 0.0 }
 0x3bc   :  { %505 = vadd.xlane.f32.xlu2 %v504_v11 }
 0x427   :  { %v503_v16 = vpop.xlane.xlu0 %502 }
 0x428   :  { %v514_v17 = vmul.f32 %v1906_v4, %v503_v16 }
 0x42a   :  { %v516_v18 = vsub.f32 %v497_v0, %v514_v17 }
 0x42c   :  { %v518_v19 = vmul.f32 %v516_v18, %v516_v18 }
 0x42e   :  { %v520_v5 = vsel %vm83_vm0, %v518_v19, 0.0 }
 0x42f   :  { %521 = vadd.xlane.f32.xlu1 %v520_v5  ;;  %v506_v20 = vpop.xlane.xlu2 %505 }
 0x430   :  { %v515_v23 = vmul.f32 %v1906_v4, %v506_v20 }
 0x432   :  { %v517_v24 = vsub.f32 %v498_v9, %v515_v23 }
 0x434   :  { %v519_v25 = vmul.f32 %v517_v24, %v517_v24 }
 0x436   :  { %v523_v26 = vsel %vm83_vm0, %v519_v25, 0.0 }
 0x437   :  { %524 = vadd.xlane.f32.xlu0 %v523_v26 }
 0x4a2   :  { %v522_v32 = vpop.xlane.xlu1 %521 }
 0x4a3   :  { %v526_v33 = vmul.f32 %v522_v32, %v1906_v4 }
 0x4a5   :  { %v528_v34 = vadd.f32 1e-05, %v526_v33 }
 0x4a7   :  { %1627 = vrsqrt.f32 %v528_v34  ;;  %vm536_vm12 = vweird.f32 %v528_v34 }
 0x4aa   :  { %v525_v38 = vpop.xlane.xlu0 %524 }
 0x4ab   :  { %v527_v39 = vmul.f32 %v525_v38, %v1906_v4 }
 0x4ad   :  { %v1628_v41 = vpop.eup %1627  ;;  %v529_v42 = vadd.f32 1e-05, %v527_v39 }
 0x4ae   :  { %v531_v44 = vmul.f32 %v1628_v41, %v528_v34  ;;  %vm537_vm11 = vweird.f32 %v1628_v41  ;;  %v1511_v34 = vld [vmem:[%s2332_s29 + $0x38] sm:$0xff] }
 0x4af   :  { %1629 = vrsqrt.f32 %v529_v42  ;;  %vm538_vm13 = vmor %vm536_vm12, %vm537_vm11  ;;  %vm546_vm15 = vweird.f32 %v529_v42  ;;  %729 = vmatpush.msra.mxu2 %v1511_v34 }
 0x4b0   :  { %v532_v45 = vmul.f32 %v1628_v41, %v531_v44 }
 0x4b1   :  { %730 = vmatpush.msra.mxu2 %v1510_v35 }
 0x4b2   :  { %v533_v46 = vmul.f32 0.5, %v532_v45 }
 0x4b3   :  { %731 = vmatpush.msra.mxu2 %v1509_v36 }
 0x4b4   :  { %v534_v47 = vsub.f32 1.5, %v533_v46 }
 0x4b5   :  { %v1630_v49 = vpop.eup %1629  ;;  %732 = vmatpush.msra.mxu2 %v1508_v37 }
 0x4b6   :  { %v535_v50 = vmul.f32 %v1628_v41, %v534_v47  ;;  %v541_v51 = vmul.f32 %v1630_v49, %v529_v42  ;;  %vm547_vm14 = vweird.f32 %v1630_v49 }
 0x4b7   :  { %vm548_vm5 = vmor %vm546_vm15, %vm547_vm14 }
 0x4b8   :  { %v539_v53 = vsel %vm538_vm13, %v1628_v41, %v535_v50  ;;  %v542_v48 = vmul.f32 %v1630_v49, %v541_v51 }
 0x4b9   :  { %v550_v54 = vmul.f32 %v539_v53, %v516_v18  ;;  %v1598_v53 = vld [vmem:[%s2319_s12] ss:$0 sm:$0xff] }
 0x4ba   :  { %v543_v56 = vmul.f32 0.5, %v542_v48 }
 0x4bb   :  { %v555_v57 = vmul.f32 %v1594_v52, %v550_v54 }
 0x4bc   :  { %v544_v58 = vsub.f32 1.5, %v543_v56  ;;  %v1599_v56 = vld [vmem:[%s2320_s13] ss:$0 sm:$0xff] }
 0x4bd   :  { %v560_v59 = vadd.f32 %v1595_v55, %v555_v57 }
 0x4be   :  { %v545_v60 = vmul.f32 %v1630_v49, %v544_v58 }
 0x4bf   :  { %1504 = vmatmul.msk.f32.vlgmr.msrb.gmra.mxu1 %vm83_vm0, %v560_v59 }
 0x4c0   :  { %v549_v61 = vsel %vm548_vm5, %v1630_v49, %v545_v60 }
 0x4c1   :  { %v551_v62 = vmul.f32 %v549_v61, %v517_v24 }
 0x4c3   :  { %v556_v63 = vmul.f32 %v1594_v52, %v551_v62 }
 0x4c5   :  { %v561_v0 = vadd.f32 %v1595_v55, %v556_v63 }
 0x4c7   :  { %1505 = vmatmul.msk.f32.gmra.mxu1 %vm83_vm0, %v561_v0 }
 0x53c   :  { %v593_v7 = vpop.f32.mrf.mxu1 }
 0x53d   :  { %v594_v9 = vadd.f32 %v1596_v6, %v593_v7 }
 0x53f   :  { %v599_v11 = vmax.f32 %v594_v9, 0.0 }
 0x541   :  { %1506 = vmatmul.msk.f32.vlgmr.msra.gmra.mxu1 %vm613_vm6, %v599_v11 }
 0x544   :  { %v596_v8 = vpop.f32.mrf.mxu1 }
 0x545   :  { %v597_v10 = vadd.f32 %v1596_v6, %v596_v8 }
 0x547   :  { %v600_v12 = vmax.f32 %v597_v10, 0.0 }
 0x549   :  { %1507 = vmatmul.msk.f32.gmra.mxu1 %vm613_vm6, %v600_v12 }
 0x5be   :  { %v637_v14 = vpop.f32.mrf.mxu1 }
 0x5bf   :  { %v638_v15 = vadd.f32 %v1597_v13, %v637_v14 }
 0x5c1   :  { %v643_v16 = vadd.f32 %v638_v15, %v560_v59 }
 0x5c3   :  { %v647_v17 = vsel %vm83_vm0, %v643_v16, 0.0 }
 0x5c4   :  { %648 = vadd.xlane.f32.xlu0 %v647_v17 }
 0x5c6   :  { %v640_v18 = vpop.f32.mrf.mxu1 }
 0x5c7   :  { %v641_v19 = vadd.f32 %v1597_v13, %v640_v18 }
 0x5c9   :  { %v644_v5 = vadd.f32 %v641_v19, %v561_v0 }
 0x5cb   :  { %v650_v20 = vsel %vm83_vm0, %v644_v5, 0.0 }
 0x5cc   :  { %651 = vadd.xlane.f32.xlu2 %v650_v20 }
 0x637   :  { %v649_v23 = vpop.xlane.xlu0 %648 }
 0x638   :  { %v653_v24 = vmul.f32 %v649_v23, %v1906_v4 }
 0x63a   :  { %v655_v25 = vsub.f32 %v643_v16, %v653_v24 }
 0x63c   :  { %v657_v26 = vmul.f32 %v655_v25, %v655_v25 }
 0x63e   :  { %v659_v27 = vsel %vm83_vm0, %v657_v26, 0.0 }
 0x63f   :  { %660 = vadd.xlane.f32.xlu1 %v659_v27  ;;  %v652_v29 = vpop.xlane.xlu2 %651 }
 0x640   :  { %v654_v30 = vmul.f32 %v652_v29, %v1906_v4 }
 0x642   :  { %v656_v31 = vsub.f32 %v644_v5, %v654_v30 }
 0x644   :  { %v658_v32 = vmul.f32 %v656_v31, %v656_v31 }
 0x646   :  { %v662_v33 = vsel %vm83_vm0, %v658_v32, 0.0 }
 0x647   :  { %663 = vadd.xlane.f32.xlu0 %v662_v33 }
 0x6b2   :  { %v661_v38 = vpop.xlane.xlu1 %660 }
 0x6b3   :  { %v665_v39 = vmul.f32 %v661_v38, %v1906_v4 }
 0x6b5   :  { %v667_v40 = vadd.f32 1e-05, %v665_v39 }
 0x6b7   :  { %1631 = vrsqrt.f32 %v667_v40  ;;  %vm675_vm8 = vweird.f32 %v667_v40 }
 0x6ba   :  { %v664_v41 = vpop.xlane.xlu0 %663 }
 0x6bb   :  { %v666_v42 = vmul.f32 %v664_v41, %v1906_v4 }
 0x6bd   :  { %v1632_v43 = vpop.eup %1631  ;;  %v668_v44 = vadd.f32 1e-05, %v666_v42 }
 0x6be   :  { %v670_v45 = vmul.f32 %v1632_v43, %v667_v40  ;;  %vm676_vm7 = vweird.f32 %v1632_v43 }
 0x6bf   :  { %1633 = vrsqrt.f32 %v668_v44  ;;  %vm677_vm9 = vmor %vm675_vm8, %vm676_vm7  ;;  %vm685_vm11 = vweird.f32 %v668_v44 }
 0x6c0   :  { %v671_v46 = vmul.f32 %v1632_v43, %v670_v45 }
 0x6c2   :  { %v672_v47 = vmul.f32 0.5, %v671_v46 }
 0x6c4   :  { %v673_v49 = vsub.f32 1.5, %v672_v47 }
 0x6c5   :  { %v1634_v50 = vpop.eup %1633 }
 0x6c6   :  { %v674_v51 = vmul.f32 %v1632_v43, %v673_v49  ;;  %v680_v52 = vmul.f32 %v1634_v50, %v668_v44  ;;  %vm686_vm10 = vweird.f32 %v1634_v50 }
 0x6c7   :  { %vm687_vm12 = vmor %vm685_vm11, %vm686_vm10 }
 0x6c8   :  { %v678_v48 = vsel %vm677_vm9, %v1632_v43, %v674_v51  ;;  %v681_v54 = vmul.f32 %v1634_v50, %v680_v52 }
 0x6c9   :  { %v689_v55 = vmul.f32 %v678_v48, %v655_v25  ;;  %v1516_v48 = vld [vmem:[%s2311_s4 + $0x28] sm:$0xff] }
 0x6ca   :  { %v682_v57 = vmul.f32 0.5, %v681_v54 }
 0x6cb   :  { %v694_v58 = vmul.f32 %v1598_v53, %v689_v55 }
 0x6cc   :  { %v683_v59 = vsub.f32 1.5, %v682_v57 }
 0x6cd   :  { %v1992_v60 = vadd.f32 %v1599_v56, %v694_v58 }
 0x6ce   :  { %v684_v61 = vmul.f32 %v1634_v50, %v683_v59 }
 0x6cf   :  { %1513 = vmatmul.msk.f32.vlgmr.msra.gmra.mxu2 %vm83_vm0, %v1992_v60 }
 0x6d0   :  { %v688_v62 = vsel %vm687_vm12, %v1634_v50, %v684_v61 }
 0x6d1   :  { %v690_v63 = vmul.f32 %v688_v62, %v656_v31 }
 0x6d3   :  { %v695_v0 = vmul.f32 %v1598_v53, %v690_v63 }
 0x6d5   :  { %v1996_v1 = vadd.f32 %v1599_v56, %v695_v0 }
 0x6d7   :  { %1514 = vmatmul.msk.f32.gmra.mxu2 %vm83_vm0, %v1996_v1 }
 0x752   :  { %v734_v3 = vpop.f32.mrf.mxu2 }
 0x753   :  { %v2003_v6 = vadd.f32 %v1600_v2, %v734_v3 }
 0x755   :  { %746 = vrot.lane.b32.xlu1 %v2003_v6, %s1668_s2 }
 0x75a   :  { %v737_v7 = vpop.f32.mrf.mxu2 }
 0x75b   :  { %v738_v9 = vadd.f32 %v1600_v2, %v737_v7 }
 0x75d   :  { %901 = vrot.lane.b32.xlu1 %v2003_v6, %s1669_s19  ;;  %931 = vrot.lane.b32.xlu0 %v738_v9, %s1667_s30  ;;  %v1580_v45 = vpack.i.bf16 %v738_v9, %v2003_v6 }
 0x75e   :  { %773 = vrot.lane.b32.xlu2 %v738_v9, %s1668_s2 }
 0x765   :  { %903 = vrot.lane.b32.xlu0 %v2003_v6, %s1667_s30 }
 0x766   :  { %929 = vrot.lane.b32.xlu2 %v738_v9, %s1669_s19 }
 0x7b8   :  { %v774_v11 = vpop.permute.xlu2 %773 }
 0x7b9   :  { %1521 = vmatpush.xpose.msk.msrb.mxu3 %vm120_vm1, %v774_v11 }
 0x7bc   :  { %1522 = vmatmul.msk.f32.vlgmr.msrb.gmra.mxu3 %vm120_vm1, %v738_v9 }
 0x7c0   :  { %v930_v12 = vpop.permute.xlu2 %929 }
 0x7c7   :  { %v747_v8 = vpop.permute.xlu1 %746 }
 0x7c8   :  { %1519 = vmatpush.xpose.msk.msra.mxu0 %vm120_vm1, %v747_v8 }
 0x7cb   :  { %1520 = vmatmul.msk.f32.vlgmr.msra.gmra.mxu0 %vm120_vm1, %v2003_v6 }
 0x7cf   :  { %v932_v10 = vpop.permute.xlu0 %931  ;;  %v902_v14 = vpop.permute.xlu1 %901 }
 0x7d0   :  { %1527 = vmatpush.xpose.msk.msrb.mxu2 %vm120_vm1, %v932_v10 }
 0x7d3   :  { %1528 = vmatmul.msk.f32.vlgmr.msrb.gmra.mxu2 %vm120_vm1, %v930_v12 }
 0x7d4   :  { %1108 = vmatpush.msra.mxu2 %v1516_v48 }
 0x7d7   :  { %v904_v13 = vpop.permute.xlu0 %903 }
 0x7d8   :  { %1525 = vmatpush.xpose.msk.msrb.mxu1 %vm120_vm1, %v904_v13 }
 0x7db   :  { %1526 = vmatmul.msk.f32.vlgmr.msrb.gmra.mxu1 %vm120_vm1, %v902_v14 }
 0x83f   :  { %v796_v15 = vpop.f32.mrf.mxu3 }
 0x840   :  { %v800_v16 = vsel %vm74_vm4, %v796_v15, -1000000.0 }
 0x841   :  { %v804_v17 = vsel %vm174_vm3, %v800_v16, -inf }
 0x842   :  { %805 = vmax.xlane.f32.xlu0 %v804_v17 }
 0x848   :  { %v769_v18 = vpop.f32.mrf.mxu0 }
 0x849   :  { %v799_v19 = vsel %vm73_vm2, %v769_v18, -1000000.0 }
 0x84a   :  { %v801_v5 = vsel %vm174_vm3, %v799_v19, -inf }
 0x84b   :  { %802 = vmax.xlane.f32.xlu2 %v801_v5 }
 0x856   :  { %v954_v20 = vpop.f32.mrf.mxu2 }
 0x857   :  { %v958_v23 = vsel %vm74_vm4, %v954_v20, -1000000.0 }
 0x858   :  { %v926_v24 = vpop.f32.mrf.mxu1  ;;  %v962_v25 = vsel %vm174_vm3, %v958_v23, -inf }
 0x859   :  { %v957_v26 = vsel %vm73_vm2, %v926_v24, -1000000.0  ;;  %963 = vmax.xlane.f32.xlu2 %v962_v25 }
 0x85a   :  { %v959_v27 = vsel %vm174_vm3, %v957_v26, -inf }
 0x85b   :  { %960 = vmax.xlane.f32.xlu1 %v959_v27 }
 0x8b5   :  { %v806_v29 = vpop.xlane.xlu0 %805 }
 0x8b6   :  { %v808_v30 = vsub.f32 %v800_v16, %v806_v29 }
 0x8b8   :  { %v811_v31 = vmul.f32 1.442695, %v808_v30 }
 0x8ba   :  { %1635 = vpow2.f32 %v811_v31 }
 0x8be   :  { %v803_v32 = vpop.xlane.xlu2 %802 }
 0x8bf   :  { %v807_v33 = vsub.f32 %v799_v19, %v803_v32 }
 0x8c0   :  { %v2039_v34 = vpop.eup %1635 }
 0x8c1   :  { %v809_v28 = vmul.f32 1.442695, %v807_v33  ;;  %v816_v35 = vsel %vm174_vm3, %v2039_v34, 0.0 }
 0x8c2   :  { %817 = vadd.xlane.f32.xlu1 %v816_v35 }
 0x8c3   :  { %1637 = vpow2.f32 %v809_v28 }
 0x8c9   :  { %v2043_v21 = vpop.eup %1637 }
 0x8ca   :  { %v813_v22 = vsel %vm174_vm3, %v2043_v21, 0.0 }
 0x8cb   :  { %814 = vadd.xlane.f32.xlu0 %v813_v22 }
 0x8cc   :  { %v964_v36 = vpop.xlane.xlu2 %963 }
 0x8cd   :  { %v966_v37 = vsub.f32 %v958_v23, %v964_v36 }
 0x8ce   :  { %v961_v38 = vpop.xlane.xlu1 %960 }
 0x8cf   :  { %v969_v39 = vmul.f32 1.442695, %v966_v37  ;;  %v965_v40 = vsub.f32 %v957_v26, %v961_v38 }
 0x8d1   :  { %1639 = vpow2.f32 %v969_v39  ;;  %v967_v41 = vmul.f32 1.442695, %v965_v40 }
 0x8d3   :  { %1641 = vpow2.f32 %v967_v41  ;;  %v1515_v41 = vld [vmem:[%s2311_s4 + $0x20] sm:$0xff] }
 0x8d4   :  { %1109 = vmatpush.msra.mxu2 %v1515_v41 }
 0x8d7   :  { %v2047_v42 = vpop.eup %1639 }
 0x8d8   :  { %v974_v43 = vsel %vm174_vm3, %v2047_v42, 0.0 }
 0x8d9   :  { %v2051_v44 = vpop.eup %1641  ;;  %975 = vadd.xlane.f32.xlu0 %v974_v43  ;;  %v1518_v43 = vld [vmem:[%s2311_s4 + $0x38] sm:$0xff] }
 0x8da   :  { %v971_v46 = vsel %vm174_vm3, %v2051_v44, 0.0  ;;  %1079 = vmatpush.msra.mxu1 %v1518_v43 }
 0x8db   :  { %1581 = vrot.lane.b32.xlu1 %v1580_v45, %s1671_s1  ;;  %972 = vadd.xlane.f32.xlu2 %v971_v46 }
 0x8f3   :  { %1586 = vrot.lane.b32.xlu2 %v1580_v45, %s1672_s0 }
 0x935   :  { %v818_v47 = vpop.xlane.xlu1 %817 }
 0x936   :  { %1643 = vrcp.f32 %v818_v47  ;;  %v845_v56 = vand.u32 2147483648, %v818_v47  ;;  %vm839_vm4 = vweird.f32 %v818_v47  ;;  %v843_v58 = vand.u32 2147483647, %v818_v47 }
 0x938   :  { %v846_v63 = vor.u32 1.1754944e-38, %v845_v56  ;;  %vm844_vm15 = vcmp.eq.f32.partialorder %v843_v58, 8.507059e+37 }
 0x93c   :  { %v1644_v49 = vpop.eup %1643 }
 0x93d   :  { %v835_v50 = vmul.f32 %v1644_v49, %v818_v47  ;;  %vm840_vm2 = vweird.f32 %v1644_v49 }
 0x93e   :  { %v815_v51 = vpop.xlane.xlu0 %814  ;;  %vm841_vm13 = vmor %vm839_vm4, %vm840_vm2 }
 0x93f   :  { %v836_v52 = vsub.f32 1.0, %v835_v50  ;;  %1645 = vrcp.f32 %v815_v51  ;;  %v830_v62 = vand.u32 2147483648, %v815_v51  ;;  %v828_v2 = vand.u32 2147483647, %v815_v51  ;;  %v1601_v50 = vld [vmem:[%s2312_s5 + $0x1] ss:$0 sm:$0xff] }
 0x940   :  { %vm824_vm5 = vweird.f32 %v815_v51 }
 0x941   :  { %v837_v53 = vmul.f32 %v1644_v49, %v836_v52  ;;  %v831_v9 = vor.u32 1.1754944e-38, %v830_v62  ;;  %vm829_vm8 = vcmp.eq.f32.partialorder %v828_v2, 8.507059e+37 }
 0x943   :  { %v838_v55 = vadd.f32 %v1644_v49, %v837_v53 }
 0x945   :  { %v1646_v54 = vpop.eup %1645  ;;  %v842_v61 = vsel %vm841_vm13, %v1644_v49, %v838_v55 }
 0x946   :  { %v820_v57 = vmul.f32 %v1646_v54, %v815_v51  ;;  %vm825_vm14 = vweird.f32 %v1646_v54  ;;  %v847_v3 = vsel %vm844_vm15, %v846_v63, %v842_v61 }
 0x947   :  { %vm826_vm7 = vmor %vm824_vm5, %vm825_vm14  ;;  %v848_v15 = vmul.f32 %v2039_v34, %v847_v3 }
 0x948   :  { %v821_v59 = vsub.f32 1.0, %v820_v57 }
 0x94a   :  { %v822_v0 = vmul.f32 %v1646_v54, %v821_v59 }
 0x94c   :  { %v823_v6 = vadd.f32 %v1646_v54, %v822_v0  ;;  %v976_v7 = vpop.xlane.xlu0 %975 }
 0x94d   :  { %v1582_v11 = vpop.permute.xlu1 %1581  ;;  %1647 = vrcp.f32 %v976_v7  ;;  %v1003_v24 = vand.u32 2147483648, %v976_v7  ;;  %v1001_v29 = vand.u32 2147483647, %v976_v7  ;;  %vm997_vm10 = vweird.f32 %v976_v7 }
 0x94e   :  { %v827_v8 = vsel %vm826_vm7, %v1646_v54, %v823_v6  ;;  %v1584_v10 = vunpack.i.h.bf16 %v1582_v11  ;;  %v1583_v12 = vunpack.i.l.bf16 %v1582_v11  ;;  %v973_v13 = vpop.xlane.xlu2 %972 }
 0x94f   :  { %v832_v14 = vsel %vm829_vm8, %v831_v9, %v827_v8  ;;  %1649 = vrcp.f32 %v973_v13  ;;  %v988_v31 = vand.u32 2147483648, %v973_v13  ;;  %v986_v34 = vand.u32 2147483647, %v973_v13  ;;  %v1540_v8 = vld [vmem:[%s2316_s8 + $0x30] sm:$0xff] }
 0x950   :  { %870 = vmatpush.msrb.mxu0 %v1583_v12  ;;  %896 = vmatpush.msra.mxu3 %v1584_v10  ;;  %v833_v16 = vmul.f32 %v2043_v21, %v832_v14  ;;  %v1004_v28 = vor.u32 1.1754944e-38, %v1003_v24  ;;  %vm1002_vm2 = vcmp.eq.f32.partialorder %v1001_v29, 8.507059e+37  ;;  %vm982_vm4 = vweird.f32 %v973_v13  ;;  %v1539_v10 = vld [vmem:[%s2316_s8 + $0x28] sm:$0xff]  ;;  %v1538_v12 = vld [vmem:[%s2316_s8 + $0x20] sm:$0xff] }
 0x951   :  { %1524 = vmatmul.msk.f32.vlgmr.msra.gmra.mxu3 %vm174_vm3, %v848_v15  ;;  %v989_v36 = vor.u32 1.1754944e-38, %v988_v31  ;;  %vm987_vm14 = vcmp.eq.f32.partialorder %v986_v34, 8.507059e+37  ;;  %v1602_v34 = vld [vmem:[%s2313_s6 + $0x1] ss:$0 sm:$0xff] }
 0x952   :  { %1523 = vmatmul.msk.f32.vlgmr.msrb.gmra.mxu0 %vm174_vm3, %v833_v16  ;;  %v1552_v16 = vld [vmem:[%s2317_s10 + $0x78] sm:$0xff] }
 0x953   :  { %v1648_v17 = vpop.eup %1647 }
 0x954   :  { %v993_v18 = vmul.f32 %v1648_v17, %v976_v7  ;;  %vm998_vm9 = vweird.f32 %v1648_v17 }
 0x955   :  { %v1650_v19 = vpop.eup %1649  ;;  %vm999_vm12 = vmor %vm997_vm10, %vm998_vm9 }
 0x956   :  { %v994_v5 = vsub.f32 1.0, %v993_v18  ;;  %v978_v20 = vmul.f32 %v1650_v19, %v973_v13  ;;  %v1587_v23 = vpop.permute.xlu2 %1586  ;;  %vm983_vm11 = vweird.f32 %v1650_v19  ;;  %v1550_v18 = vld [vmem:[%s2317_s10 + $0x68] sm:$0xff] }
 0x957   :  { %v1589_v25 = vunpack.i.h.bf16 %v1587_v23  ;;  %v1588_v26 = vunpack.i.l.bf16 %v1587_v23  ;;  %vm984_vm13 = vmor %vm982_vm4, %vm983_vm11 }
 0x958   :  { %v995_v27 = vmul.f32 %v1648_v17, %v994_v5  ;;  %v979_v30 = vsub.f32 1.0, %v978_v20  ;;  %v1549_v20 = vld [vmem:[%s2317_s10 + $0x60] sm:$0xff] }
 0x959   :  { %1028 = vmatpush.msra.mxu0 %v1588_v26  ;;  %1054 = vmatpush.msrb.mxu3 %v1589_v25  ;;  %v1548_v25 = vld [vmem:[%s2317_s10 + $0x58] sm:$0xff] }
 0x95a   :  { %v996_v32 = vadd.f32 %v1648_v17, %v995_v27  ;;  %v980_v33 = vmul.f32 %v1650_v19, %v979_v30 }
 0x95b   :  { %1253 = vmatpush.msra.mxu3 %v1552_v16  ;;  %v1330_v16 = vld [vmem:[%s2321_s14 + $0x10] sm:$0xff] }
 0x95c   :  { %v1000_v35 = vsel %vm999_vm12, %v1648_v17, %v996_v32  ;;  %v981_v21 = vadd.f32 %v1650_v19, %v980_v33  ;;  %v1551_v17 = vld [vmem:[%s2317_s10 + $0x70] sm:$0xff] }
 0x95d   :  { %v1005_v22 = vsel %vm1002_vm2, %v1004_v28, %v1000_v35  ;;  %1254 = vmatpush.msra.mxu3 %v1551_v17  ;;  %v1331_v17 = vld [vmem:[%s2321_s14 + $0x18] sm:$0xff] }
 0x95e   :  { %v985_v37 = vsel %vm984_vm13, %v1650_v19, %v981_v21  ;;  %v1006_v38 = vmul.f32 %v2047_v42, %v1005_v22  ;;  %v1517_v42 = vld [vmem:[%s2311_s4 + $0x30] sm:$0xff]  ;;  %v1603_v22 = vld [vmem:[%s2314_s7 + $0x1] ss:$0 sm:$0xff] }
 0x95f   :  { %v990_v39 = vsel %vm987_vm14, %v989_v36, %v985_v37  ;;  %1080 = vmatpush.msra.mxu1 %v1517_v42  ;;  %1255 = vmatpush.msra.mxu3 %v1550_v18  ;;  %v1328_v18 = vld [vmem:[%s2321_s14] sm:$0xff] }
 0x960   :  { %1530 = vmatmul.msk.f32.vlgmr.msrb.gmra.mxu3 %vm174_vm3, %v1006_v38  ;;  %v991_v40 = vmul.f32 %v2051_v44, %v990_v39 }
 0x961   :  { %1256 = vmatpush.msra.mxu3 %v1549_v20 }
 0x962   :  { %1529 = vmatmul.msk.f32.vlgmr.msra.gmra.mxu0 %vm174_vm3, %v991_v40 }
 0x963   :  { %1257 = vmatpush.msra.mxu3 %v1548_v25  ;;  %v1412_v25 = vld [vmem:[%s2322_s16 + $0x70] sm:$0xff] }
 0x9cf   :  { %v872_v45 = vpop.f32.mrf.mxu0 }
 0x9d0   :  { %1533 = vmatmul.msk.f32.vlgmr.msra.gmra.mxu2 %vm120_vm1, %v872_v45 }
 0x9d4   :  { %v898_v44 = vpop.f32.mrf.mxu3 }
 0x9d8   :  { %1534 = vmatmul.msk.f32.gmra.mxu2 %vm120_vm1, %v898_v44  ;;  %v1547_v44 = vld [vmem:[%s2317_s10 + $0x50] sm:$0xff] }
 0x9d9   :  { %1258 = vmatpush.msra.mxu3 %v1547_v44 }
 0x9df   :  { %v1030_v46 = vpop.f32.mrf.mxu0 }
 0x9e0   :  { %1531 = vmatmul.msk.f32.vlgmr.msra.gmra.mxu1 %vm120_vm1, %v1030_v46  ;;  %v1546_v46 = vld [vmem:[%s2317_s10 + $0x48] sm:$0xff] }
 0x9e1   :  { %1259 = vmatpush.msra.mxu3 %v1546_v46  ;;  %v1405_v46 = vld [vmem:[%s2322_s16 + $0x38] sm:$0xff] }
 0x9e3   :  { %v1056_v47 = vpop.f32.mrf.mxu3 }
 0x9e8   :  { %1532 = vmatmul.msk.f32.gmra.mxu1 %vm120_vm1, %v1056_v47  ;;  %v1545_v47 = vld [vmem:[%s2317_s10 + $0x40] sm:$0xff] }
 0x9e9   :  { %1260 = vmatpush.msra.mxu3 %v1545_v47 }
 0xa53   :  { %v1111_v49 = vpop.f32.mrf.mxu2 }
 0xa5b   :  { %v1114_v55 = vpop.f32.mrf.mxu2 }
 0xa5d   :  { %v1082_v51 = vpop.f32.mrf.mxu1 }
 0xa5e   :  { %v1112_v52 = vadd.f32 %v1111_v49, %v1082_v51  ;;  %v1604_v49 = vld [vmem:[%s2315_s9 + $0x1] ss:$0 sm:$0xff] }
 0xa60   :  { %v1122_v53 = vadd.f32 %v1601_v50, %v1112_v52 }
 0xa62   :  { %v1124_v48 = vadd.f32 %v1122_v53, %v1992_v60 }
 0xa64   :  { %v1130_v54 = vsel %vm83_vm0, %v1124_v48, 0.0 }
 0xa65   :  { %1131 = vadd.xlane.f32.xlu0 %v1130_v54  ;;  %v1085_v56 = vpop.f32.mrf.mxu1 }
 0xa66   :  { %v1115_v57 = vadd.f32 %v1114_v55, %v1085_v56  ;;  %v1605_v55 = vld [vmem:[%s2318_s11 + $0x1] ss:$0 sm:$0xff] }
 0xa68   :  { %v1123_v58 = vadd.f32 %v1601_v50, %v1115_v57 }
 0xa6a   :  { %v1125_v59 = vadd.f32 %v1123_v58, %v1996_v1  ;;  %v1541_v1 = vld [vmem:[%s2316_s8 + $0x38] sm:$0xff] }
 0xa6b   :  { %1212 = vmatpush.msrb.mxu0 %v1541_v1 }
 0xa6c   :  { %v1133_v61 = vsel %vm83_vm0, %v1125_v59, 0.0 }
 0xa6d   :  { %1134 = vadd.xlane.f32.xlu0 %v1133_v61  ;;  %1213 = vmatpush.msrb.mxu0 %v1540_v8 }
 0xa6f   :  { %1214 = vmatpush.msrb.mxu0 %v1539_v10 }
 0xa71   :  { %1215 = vmatpush.msrb.mxu0 %v1538_v12  ;;  %v1334_v12 = vld [vmem:[%s2321_s14 + $0x30] sm:$0xff] }
 0xa72   :  { %1360 = vmatpush.msrb.mxu1 %v1334_v12  ;;  %v1417_v12 = vld [vmem:[%s2322_s16 + $0x98] sm:$0xff] }
 0xad8   :  { %v1132_v62 = vpop.xlane.xlu0 %1131 }
 0xad9   :  { %v1136_v63 = vmul.f32 %v1132_v62, %v1906_v4 }
 0xadb   :  { %v1138_v0 = vsub.f32 %v1124_v48, %v1136_v63 }
 0xadd   :  { %v1140_v2 = vmul.f32 %v1138_v0, %v1138_v0 }
 0xadf   :  { %v1142_v3 = vsel %vm83_vm0, %v1140_v2, 0.0 }
 0xae0   :  { %1143 = vadd.xlane.f32.xlu0 %v1142_v3  ;;  %v1135_v60 = vpop.xlane.xlu0 %1134 }
 0xae1   :  { %v1137_v6 = vmul.f32 %v1135_v60, %v1906_v4 }
 0xae3   :  { %v1139_v7 = vsub.f32 %v1125_v59, %v1137_v6 }
 0xae5   :  { %v1141_v9 = vmul.f32 %v1139_v7, %v1139_v7 }
 0xae7   :  { %v1145_v11 = vsel %vm83_vm0, %v1141_v9, 0.0 }
 0xae8   :  { %1146 = vadd.xlane.f32.xlu1 %v1145_v11 }
 0xb53   :  { %v1144_v13 = vpop.xlane.xlu0 %1143 }
 0xb54   :  { %v1148_v14 = vmul.f32 %v1144_v13, %v1906_v4  ;;  %v1335_v13 = vld [vmem:[%s2321_s14 + $0x38] sm:$0xff] }
 0xb55   :  { %1383 = vmatpush.msrb.mxu2 %v1335_v13  ;;  %v1416_v13 = vld [vmem:[%s2322_s16 + $0x90] sm:$0xff] }
 0xb56   :  { %v1150_v15 = vadd.f32 1e-05, %v1148_v14  ;;  %v1332_v14 = vld [vmem:[%s2321_s14 + $0x20] sm:$0xff] }
 0xb57   :  { %1361 = vmatpush.msrb.mxu1 %v1332_v14  ;;  %v1415_v14 = vld [vmem:[%s2322_s16 + $0x88] sm:$0xff] }
 0xb58   :  { %1651 = vrsqrt.f32 %v1150_v15  ;;  %vm1158_vm3 = vweird.f32 %v1150_v15 }
 0xb59   :  { %1362 = vmatpush.msrb.mxu1 %v1330_v16  ;;  %v1336_v16 = vld [vmem:[%s2324_s15] sm:$0x3] }
 0xb5b   :  { %v1147_v19 = vpop.xlane.xlu1 %1146  ;;  %1363 = vmatpush.msrb.mxu1 %v1328_v18 }
 0xb5c   :  { %v1149_v5 = vmul.f32 %v1147_v19, %v1906_v4  ;;  %v1329_v19 = vld [vmem:[%s2321_s14 + $0x8] sm:$0xff] }
 0xb5e   :  { %v1652_v23 = vpop.eup %1651  ;;  %v1151_v24 = vadd.f32 1e-05, %v1149_v5 }
 0xb5f   :  { %v1153_v26 = vmul.f32 %v1652_v23, %v1150_v15  ;;  %vm1159_vm1 = vweird.f32 %v1652_v23  ;;  %v1333_v15 = vld [vmem:[%s2321_s14 + $0x28] sm:$0xff] }
 0xb60   :  { %1653 = vrsqrt.f32 %v1151_v24  ;;  %vm1160_vm15 = vmor %vm1158_vm3, %vm1159_vm1  ;;  %vm1168_vm7 = vweird.f32 %v1151_v24  ;;  %1384 = vmatpush.msrb.mxu2 %v1333_v15  ;;  %v1414_v15 = vld [vmem:[%s2322_s16 + $0x80] sm:$0xff] }
 0xb61   :  { %v1154_v27 = vmul.f32 %v1652_v23, %v1153_v26  ;;  %v1429_v26 = vld [vmem:[%s2322_s16 + $0xf8] sm:$0xff] }
 0xb62   :  { %1385 = vmatpush.msrb.mxu2 %v1331_v17  ;;  %1457 = vmatpush.msrb.mxu3 %v1429_v26  ;;  %v1338_v17 = vperm.slane %v1336_v16, 0 }
 0xb63   :  { %v1155_v29 = vmul.f32 0.5, %v1154_v27  ;;  %v1411_v27 = vld [vmem:[%s2322_s16 + $0x68] sm:$0xff] }
 0xb64   :  { %1386 = vmatpush.msrb.mxu2 %v1329_v19 }
 0xb65   :  { %v1156_v30 = vsub.f32 1.5, %v1155_v29  ;;  %v1428_v29 = vld [vmem:[%s2322_s16 + $0xf0] sm:$0xff] }
 0xb66   :  { %v1654_v31 = vpop.eup %1653  ;;  %1458 = vmatpush.msrb.mxu3 %v1428_v29 }
 0xb67   :  { %v1157_v32 = vmul.f32 %v1652_v23, %v1156_v30  ;;  %v1163_v33 = vmul.f32 %v1654_v31, %v1151_v24  ;;  %vm1169_vm5 = vweird.f32 %v1654_v31  ;;  %v1413_v24 = vld [vmem:[%s2322_s16 + $0x78] sm:$0xff] }
 0xb68   :  { %vm1170_vm8 = vmor %vm1168_vm7, %vm1169_vm5  ;;  %1434 = vmatpush.msra.mxu0 %v1413_v24 }
 0xb69   :  { %v1161_v28 = vsel %vm1160_vm15, %v1652_v23, %v1157_v32  ;;  %v1164_v35 = vmul.f32 %v1654_v31, %v1163_v33  ;;  %v1410_v33 = vld [vmem:[%s2322_s16 + $0x60] sm:$0xff] }
 0xb6a   :  { %v1172_v21 = vmul.f32 %v1161_v28, %v1138_v0  ;;  %1435 = vmatpush.msra.mxu0 %v1412_v25 }
 0xb6b   :  { %v1165_v36 = vmul.f32 0.5, %v1164_v35 }
 0xb6c   :  { %v1177_v37 = vmul.f32 %v1602_v34, %v1172_v21  ;;  %1436 = vmatpush.msra.mxu0 %v1411_v27  ;;  %v1409_v21 = vld [vmem:[%s2322_s16 + $0x58] sm:$0xff] }
 0xb6d   :  { %v1166_v38 = vsub.f32 1.5, %v1165_v36  ;;  %v1408_v36 = vld [vmem:[%s2322_s16 + $0x50] sm:$0xff] }
 0xb6e   :  { %v1182_v39 = vadd.f32 %v1603_v22, %v1177_v37  ;;  %1437 = vmatpush.msra.mxu0 %v1410_v33 }
 0xb6f   :  { %v1167_v40 = vmul.f32 %v1654_v31, %v1166_v38  ;;  %v1424_v38 = vld [vmem:[%s2322_s16 + $0xd0] sm:$0xff] }
 0xb70   :  { %1543 = vmatmul.msk.f32.vlgmr.msrb.gmra.mxu0 %vm83_vm0, %v1182_v39 }
 0xb71   :  { %v1171_v41 = vsel %vm1170_vm8, %v1654_v31, %v1167_v40  ;;  %v1427_v31 = vld [vmem:[%s2322_s16 + $0xe8] sm:$0xff]  ;;  %1438 = vmatpush.msra.mxu0 %v1409_v21 }
 0xb72   :  { %v1173_v43 = vmul.f32 %v1171_v41, %v1139_v7  ;;  %1459 = vmatpush.msrb.mxu3 %v1427_v31  ;;  %v1423_v41 = vld [vmem:[%s2322_s16 + $0xc8] sm:$0xff] }
 0xb73   :  { %1439 = vmatpush.msra.mxu0 %v1408_v36 }
 0xb74   :  { %v1178_v42 = vmul.f32 %v1602_v34, %v1173_v43  ;;  %v1426_v34 = vld [vmem:[%s2322_s16 + $0xe0] sm:$0xff] }
 0xb75   :  { %1460 = vmatpush.msrb.mxu3 %v1426_v34  ;;  %v1406_v43 = vld [vmem:[%s2322_s16 + $0x40] sm:$0xff] }
 0xb76   :  { %v1183_v45 = vadd.f32 %v1603_v22, %v1178_v42  ;;  %v1608_v34 = vld [vmem:[%s2323_s17] ss:$0 sm:$0xff] }
 0xb78   :  { %1544 = vmatmul.msk.f32.gmra.mxu0 %vm83_vm0, %v1183_v45 }
 0xbed   :  { %v1217_v50 = vpop.f32.mrf.mxu0 }
 0xbee   :  { %v1218_v51 = vadd.f32 %v1604_v49, %v1217_v50  ;;  %v1606_v50 = vld [vmem:[%s2319_s12 + $0x1] ss:$0 sm:$0xff] }
 0xbf0   :  { %v1223_v52 = vmax.f32 %v1218_v51, 0.0  ;;  %v1404_v51 = vld [vmem:[%s2322_s16 + $0x30] sm:$0xff] }
 0xbf2   :  { %1554 = vmatmul.msk.f32.vlgmr.msra.gmra.mxu3 %vm613_vm6, %v1223_v52 }
 0xbf5   :  { %v1220_v53 = vpop.f32.mrf.mxu0 }
 0xbf6   :  { %v1221_v48 = vadd.f32 %v1604_v49, %v1220_v53 }
 0xbf8   :  { %v1224_v54 = vmax.f32 %v1221_v48, 0.0 }
 0xbfa   :  { %1555 = vmatmul.msk.f32.gmra.mxu3 %vm613_vm6, %v1224_v54  ;;  %v1607_v54 = vld [vmem:[%s2320_s13 + $0x1] ss:$0 sm:$0xff] }
 0xc75   :  { %v1262_v56 = vpop.f32.mrf.mxu3 }
 0xc76   :  { %v1263_v57 = vadd.f32 %v1605_v55, %v1262_v56 }
 0xc78   :  { %v1268_v58 = vadd.f32 %v1263_v57, %v1182_v39  ;;  %v1407_v39 = vld [vmem:[%s2322_s16 + $0x48] sm:$0xff] }
 0xc79   :  { %1440 = vmatpush.msra.mxu0 %v1407_v39 }
 0xc7a   :  { %v1274_v59 = vsel %vm83_vm0, %v1268_v58, 0.0 }
 0xc7b   :  { %1275 = vadd.xlane.f32.xlu2 %v1274_v59  ;;  %1441 = vmatpush.msra.mxu0 %v1406_v43 }
 0xc7d   :  { %v1265_v61 = vpop.f32.mrf.mxu3  ;;  %1442 = vmatpush.msra.mxu0 %v1405_v46 }
 0xc7e   :  { %v1266_v62 = vadd.f32 %v1605_v55, %v1265_v61  ;;  %v1403_v55 = vld [vmem:[%s2322_s16 + $0x28] sm:$0xff] }
 0xc7f   :  { %1443 = vmatpush.msra.mxu0 %v1404_v51 }
 0xc80   :  { %v1269_v63 = vadd.f32 %v1266_v62, %v1183_v45  ;;  %v1422_v45 = vld [vmem:[%s2322_s16 + $0xc0] sm:$0xff] }
 0xc81   :  { %1444 = vmatpush.msra.mxu0 %v1403_v55 }
 0xc82   :  { %v1277_v0 = vsel %vm83_vm0, %v1269_v63, 0.0 }
 0xc83   :  { %1278 = vadd.xlane.f32.xlu0 %v1277_v0 }
 0xcee   :  { %v1276_v2 = vpop.xlane.xlu2 %1275 }
 0xcef   :  { %v1280_v3 = vmul.f32 %v1276_v2, %v1906_v4 }
 0xcf1   :  { %v2150_v60 = vsub.f32 %v1268_v58, %v1280_v3  ;;  %v1402_v3 = vld [vmem:[%s2322_s16 + $0x20] sm:$0xff] }
 0xcf2   :  { %1445 = vmatpush.msra.mxu0 %v1402_v3 }
 0xcf3   :  { %v1284_v6 = vmul.f32 %v2150_v60, %v2150_v60 }
 0xcf5   :  { %v1286_v7 = vsel %vm83_vm0, %v1284_v6, 0.0  ;;  %v1401_v6 = vld [vmem:[%s2322_s16 + $0x18] sm:$0xff] }
 0xcf6   :  { %v1279_v9 = vpop.xlane.xlu0 %1278  ;;  %1287 = vadd.xlane.f32.xlu0 %v1286_v7  ;;  %v1420_v7 = vld [vmem:[%s2322_s16 + $0xb0] sm:$0xff]  ;;  %1446 = vmatpush.msra.mxu0 %v1401_v6 }
 0xcf7   :  { %v1281_v11 = vmul.f32 %v1279_v9, %v1906_v4  ;;  %v1400_v9 = vld [vmem:[%s2322_s16 + $0x10] sm:$0xff] }
 0xcf8   :  { %1447 = vmatpush.msra.mxu0 %v1400_v9 }
 0xcf9   :  { %v2156_v1 = vsub.f32 %v1269_v63, %v1281_v11  ;;  %v1419_v11 = vld [vmem:[%s2322_s16 + $0xa8] sm:$0xff] }
 0xcfb   :  { %v1285_v8 = vmul.f32 %v2156_v1, %v2156_v1 }
 0xcfd   :  { %v1289_v10 = vsel %vm83_vm0, %v1285_v8, 0.0  ;;  %v1418_v8 = vld [vmem:[%s2322_s16 + $0xa0] sm:$0xff] }
 0xcfe   :  { %1290 = vadd.xlane.f32.xlu0 %v1289_v10  ;;  %v1398_v10 = vld [vmem:[%s2322_s16] sm:$0xff] }
 0xd69   :  { %v1288_v5 = vpop.xlane.xlu0 %1287 }
 0xd6a   :  { %v1292_v20 = vmul.f32 %v1288_v5, %v1906_v4  ;;  %v1339_v5 = vperm.slane %v1336_v16, 1 }
 0xd6c   :  { %v1294_v23 = vadd.f32 1e-05, %v1292_v20 }
 0xd6e   :  { %1655 = vrsqrt.f32 %v1294_v23  ;;  %vm1302_vm9 = vweird.f32 %v1294_v23 }
 0xd71   :  { %v1291_v30 = vpop.xlane.xlu0 %1290 }
 0xd72   :  { %v1293_v32 = vmul.f32 %v1291_v30, %v1906_v4  ;;  %v1425_v4 = vld [vmem:[%s2322_s16 + $0xd8] sm:$0xff] }
 0xd73   :  { %1461 = vmatpush.msrb.mxu3 %v1425_v4 }
 0xd74   :  { %v1656_v28 = vpop.eup %1655  ;;  %v1295_v35 = vadd.f32 1e-05, %v1293_v32 }
 0xd75   :  { %v1297_v22 = vmul.f32 %v1656_v28, %v1294_v23  ;;  %1462 = vmatpush.msrb.mxu3 %v1424_v38  ;;  %vm1303_vm6 = vweird.f32 %v1656_v28 }
 0xd76   :  { %1657 = vrsqrt.f32 %v1295_v35  ;;  %vm1304_vm10 = vmor %vm1302_vm9, %vm1303_vm6  ;;  %vm1312_vm12 = vweird.f32 %v1295_v35 }
 0xd77   :  { %v1298_v37 = vmul.f32 %v1656_v28, %v1297_v22  ;;  %1463 = vmatpush.msrb.mxu3 %v1423_v41 }
 0xd79   :  { %v1299_v40 = vmul.f32 0.5, %v1298_v37  ;;  %1464 = vmatpush.msrb.mxu3 %v1422_v45 }
 0xd7b   :  { %v1300_v42 = vsub.f32 1.5, %v1299_v40 }
 0xd7c   :  { %v1658_v44 = vpop.eup %1657 }
 0xd7d   :  { %v1301_v47 = vmul.f32 %v1656_v28, %v1300_v42  ;;  %v1307_v49 = vmul.f32 %v1658_v44, %v1295_v35  ;;  %vm1313_vm11 = vweird.f32 %v1658_v44 }
 0xd7e   :  { %vm1314_vm2 = vmor %vm1312_vm12, %vm1313_vm11 }
 0xd7f   :  { %v1305_v52 = vsel %vm1304_vm10, %v1656_v28, %v1301_v47  ;;  %v1308_v53 = vmul.f32 %v1658_v44, %v1307_v49 }
 0xd80   :  { %v1316_v48 = vmul.f32 %v1305_v52, %v2150_v60  ;;  %v1421_v60 = vld [vmem:[%s2322_s16 + $0xb8] sm:$0xff] }
 0xd81   :  { %v1309_v56 = vmul.f32 0.5, %v1308_v53  ;;  %1465 = vmatpush.msrb.mxu3 %v1421_v60 }
 0xd82   :  { %v1321_v57 = vmul.f32 %v1606_v50, %v1316_v48 }
 0xd83   :  { %v1310_v58 = vsub.f32 1.5, %v1309_v56  ;;  %1466 = vmatpush.msrb.mxu3 %v1420_v7 }
 0xd84   :  { %v1326_v59 = vadd.f32 %v1607_v54, %v1321_v57 }
 0xd85   :  { %v1311_v61 = vmul.f32 %v1658_v44, %v1310_v58  ;;  %1467 = vmatpush.msrb.mxu3 %v1419_v11 }
 0xd86   :  { %1558 = vmatmul.msk.f32.vlgmr.msrb.gmra.mxu1 %vm83_vm0, %v1326_v59  ;;  %1560 = vmatmul.msk.f32.vlgmr.msrb.gmra.mxu2 %vm83_vm0, %v1326_v59 }
 0xd87   :  { %v1315_v62 = vsel %vm1314_vm2, %v1658_v44, %v1311_v61  ;;  %1468 = vmatpush.msrb.mxu3 %v1418_v8 }
 0xd88   :  { %v1317_v63 = vmul.f32 %v1315_v62, %v2156_v1  ;;  %v1399_v1 = vld [vmem:[%s2322_s16 + $0x8] sm:$0xff] }
 0xd89   :  { %1448 = vmatpush.msra.mxu0 %v1399_v1  ;;  %1469 = vmatpush.msrb.mxu3 %v1417_v12 }
 0xd8a   :  { %v1322_v0 = vmul.f32 %v1606_v50, %v1317_v63 }
 0xd8b   :  { %1449 = vmatpush.msra.mxu0 %v1398_v10  ;;  %1470 = vmatpush.msrb.mxu3 %v1416_v13 }
 0xd8c   :  { %v1327_v2 = vadd.f32 %v1607_v54, %v1322_v0 }
 0xd8d   :  { %1471 = vmatpush.msrb.mxu3 %v1415_v14 }
 0xd8e   :  { %1559 = vmatmul.msk.f32.gmra.mxu1 %vm83_vm0, %v1327_v2  ;;  %1561 = vmatmul.msk.f32.gmra.mxu2 %vm83_vm0, %v1327_v2 }
 0xd8f   :  { %1472 = vmatpush.msrb.mxu3 %v1414_v15 }
 0xe03   :  { %v1365_v18 = vpop.f32.mrf.mxu1 }
 0xe04   :  { %v1366_v19 = vadd.f32 %v1365_v18, %v1338_v17 }
 0xe06   :  { %1659 = vtanh.f32 %v1366_v19 }
 0xe09   :  { %v1388_v20 = vpop.f32.mrf.mxu2 }
 0xe0a   :  { %v1389_v23 = vadd.f32 %v1388_v20, %v1339_v5 }
 0xe0b   :  { %v1368_v24 = vpop.f32.mrf.mxu1 }
 0xe0c   :  { %v1660_v25 = vpop.eup %1659  ;;  %1661 = vtanh.f32 %v1389_v23  ;;  %v1369_v26 = vadd.f32 %v1368_v24, %v1338_v17 }
 0xe0d   :  { %1450 = vmatmul.f32.vlgmr.msra.gmra.mxu0 %v1660_v25 }
 0xe0e   :  { %1663 = vtanh.f32 %v1369_v26 }
 0xe11   :  { %v1391_v27 = vpop.f32.mrf.mxu2 }
 0xe12   :  { %v1662_v29 = vpop.eup %1661  ;;  %v1392_v30 = vadd.f32 %v1391_v27, %v1339_v5 }
 0xe13   :  { %1473 = vmatmul.f32.vlgmr.msrb.gmra.mxu3 %v1662_v29 }
 0xe14   :  { %v1664_v31 = vpop.eup %1663  ;;  %1665 = vtanh.f32 %v1392_v30 }
 0xe15   :  { %1453 = vmatmul.f32.gmra.mxu0 %v1664_v31 }
 0xe1a   :  { %v1666_v32 = vpop.eup %1665 }
 0xe1b   :  { %1476 = vmatmul.f32.gmra.mxu3 %v1666_v32 }
 0xe8a   :  { %v1451_v33 = vpop.f32.mrf.mxu0 }
 0xe8b   :  { %v1452_v28 = vadd.f32 %v1608_v34, %v1451_v33 }
 0xe92   :  { %v1454_v22 = vpop.f32.mrf.mxu0 }
 0xe93   :  { %v1455_v4 = vadd.f32 %v1608_v34, %v1454_v22 }
 0xe96   :  { %v1474_v35 = vpop.f32.mrf.mxu3 }
 0xe97   :  { %v1475_v21 = vadd.f32 %v1474_v35, %v1452_v28 }
 0xe99   :  { %1480 = vst [vmem:[%s2325_s18] sm:$0xff] %v1475_v21 }
 0xe9e   :  { %v1477_v36 = vpop.f32.mrf.mxu3 }
 0xe9f   :  { %v1478_v37 = vadd.f32 %v1477_v36, %v1455_v4 }
 0xea1   :  { %1481 = vst [vmem:[%s2325_s18 + $0x8] sm:$0xff] %v1478_v37 }

</bundles_post_ra>
